<compile_context>
chip_gen: v7x
topology: tpu7x:2x2x1
jax: 0.10.0
libtpu: 0.0.40
codegen_flags: <defaults>
</compile_context>

<pallas_src>
import functools

import jax
import jax.numpy as jnp
from jax.experimental import pallas as pl
from jax.experimental.pallas import tpu as pltpu


# ---------------------------------------------------------------------------
# Kernel: per-token-tile expert FFN (SwiGLU); the expert is chosen per tile
# through a scalar-prefetched tile->expert table used by the weight index_maps.
# ---------------------------------------------------------------------------
def _expert_ffn_kernel(tile_expert_ref, x_ref, w1_ref, w3_ref, w2_ref,
                       out_ref, acc_ref):
    """Grid = (token tile i, hidden tile h).

    tile_expert_ref : (n_tiles,) int32 in SMEM (consumed by the index_maps)
    x_ref   : (tm, D)    routed tokens of this tile (single expert per tile)
    w1_ref  : (1, D, th) up-projection slice of this tile's expert
    w3_ref  : (1, D, th) gate-projection slice
    w2_ref  : (1, th, D) down-projection slice
    out_ref : (tm, D)    written once, lane dense, at the last h step
    acc_ref : (tm, D)    f32 accumulator across h
    """
    del tile_expert_ref  # only used by the index_maps
    h = pl.program_id(1)

    @pl.when(h == 0)
    def _():
        acc_ref[...] = jnp.zeros_like(acc_ref)

    x = x_ref[...]                     # (tm, D)   compute dtype
    w1 = w1_ref[0]                     # (D, th)
    w3 = w3_ref[0]                     # (D, th)
    w2 = w2_ref[0]                     # (th, D)

    h1 = jnp.dot(x, w1, preferred_element_type=jnp.float32)       # (tm, th)
    h3 = jnp.dot(x, w3, preferred_element_type=jnp.float32)       # (tm, th)
    act = (h1 * jax.nn.sigmoid(h1)) * h3                          # SwiGLU, f32
    acc_ref[...] += jnp.dot(act.astype(x.dtype), w2,
                            preferred_element_type=jnp.float32)   # (tm, D)

    @pl.when(h == pl.num_programs(1) - 1)
    def _():
        out_ref[...] = acc_ref[...].astype(out_ref.dtype)


# ---------------------------------------------------------------------------
# Tiling / VMEM plan
# ---------------------------------------------------------------------------
def _round_up(v, m):
    return ((v + m - 1) // m) * m


def _vmem_budget_bytes():
    try:
        cap = int(pltpu.get_tpu_info().vmem_capacity_bytes)
    except Exception:  # noqa: BLE001 - robust fallback (fits every generation)
        cap = 64 * 1024 * 1024
    return (cap * 7) // 8            # leave headroom for compiler scratch


def _choose_tiles(total_rows, D, H, itemsize, vmem_budget, max_token_tile):
    # th: prefer 512/256 (fills the 256x256 MXU on v6e/v7x); arithmetic
    # intensity on the weight stream scales with tm, so shrink th before tm.
    th_opts = [c for c in (512, 256) if H % c == 0]
    if not th_opts and H % 128 == 0:
        th_opts = [128]
    if not th_opts:
        th_opts = [H]
    tm_cap = max(8, _round_up(total_rows, 8))
    tm_opts = [t for t in (1024, 512, 256, 128, 64, 32, 16, 8)
               if t <= tm_cap and (max_token_tile is None or t <= max_token_tile)]
    if not tm_opts:
        tm_opts = [8]
    for tm in tm_opts:                        # largest tm first (primary knob)
        for th in th_opts:                    # then largest th that still fits
            need = 2 * itemsize * D * (2 * tm + 3 * th) + 4 * tm * D
            if need <= vmem_budget:
                return tm, th, need
    tm, th = tm_opts[-1], th_opts[-1]
    return tm, th, 2 * itemsize * D * (2 * tm + 3 * th) + 4 * tm * D


# ---------------------------------------------------------------------------
# Wrapper: gating + routing metadata (plain JAX) around the routed kernel
# ---------------------------------------------------------------------------
def moe_forward(x, gate_w, w1, w2, w3, num_experts_per_tok,
                compute_dtype=jnp.bfloat16, max_token_tile=None):
    """x: (T, D). gate_w: (E, D). w1, w3: (E, H, D). w2: (E, D, H)."""
    T, D = x.shape
    E, H, _ = w1.shape
    K = num_experts_per_tok
    TK = T * K

    # ---- static tiling plan ----
    itm = jnp.dtype(compute_dtype).itemsize
    vmem_budget = _vmem_budget_bytes()
    tm, th, need = _choose_tiles(TK, D, H, itm, vmem_budget, max_token_tile)
    vmem_limit = int(min(vmem_budget, max(2 * need, 32 * 1024 * 1024)))

    # Static upper bound on padded routed rows (each expert group padded to a
    # multiple of tm).  n_tiles >= E + 1, so the parallel axis always has >= 2
    # programs (keeps both v7x TensorCores busy).
    P = _round_up(TK, tm) + E * tm
    n_tiles = P // tm

    # ---- gating (small, plain JAX) ----
    gate_logits = (x @ gate_w.T).astype(jnp.float32)                 # (T, E)
    topk_vals, topk_idx = jax.lax.top_k(gate_logits, K)              # (T, K)
    topk_w = jax.nn.softmax(topk_vals, axis=-1)                      # (T, K) f32

    # ---- routing metadata: sort assignments by expert, pad groups to tm ----
    flat_expert = topk_idx.reshape(TK).astype(jnp.int32)
    flat_token = jnp.broadcast_to(jnp.arange(T, dtype=jnp.int32)[:, None],
                                  (T, K)).reshape(TK)
    flat_w = topk_w.reshape(TK)

    order = jnp.argsort(flat_expert)
    sorted_expert = flat_expert[order]
    sorted_token = flat_token[order]
    sorted_w = flat_w[order]

    group_sizes = jnp.bincount(flat_expert, length=E).astype(jnp.int32)   # (E,)
    padded_sizes = ((group_sizes + tm - 1) // tm) * tm
    padded_ends = jnp.cumsum(padded_sizes).astype(jnp.int32)
    padded_starts = padded_ends - padded_sizes
    group_ends = jnp.cumsum(group_sizes).astype(jnp.int32)
    group_starts = group_ends - group_sizes

    rank_in_group = jnp.arange(TK, dtype=jnp.int32) - group_starts[sorted_expert]
    dest_row = padded_starts[sorted_expert] + rank_in_group               # < P

    # Padding rows point at token 0 but carry a combine weight of 0, so they
    # never reach the output (and produce only finite values in the kernel).
    padded_token = jnp.zeros((P,), jnp.int32).at[dest_row].set(sorted_token)
    padded_w = jnp.zeros((P,), jnp.float32).at[dest_row].set(sorted_w)

    tile_starts = jnp.arange(n_tiles, dtype=jnp.int32) * tm
    tile_expert = jnp.sum(padded_ends[None, :] <= tile_starts[:, None],
                          axis=1).astype(jnp.int32)
    tile_expert = jnp.minimum(tile_expert, E - 1)     # trailing empty tiles

    # ---- kernel operands ----
    x_routed = x[padded_token].astype(compute_dtype)                  # (P, D)
    # One-time weight prep (free in steady state: store them this way): cast to
    # the MXU dtype and transpose into plain (in, out) layout so every in-kernel
    # dot is the standard NN form — no per-tile relayouts.
    w1c = jnp.swapaxes(w1, 1, 2).astype(compute_dtype)                # (E, D, H)
    w3c = jnp.swapaxes(w3, 1, 2).astype(compute_dtype)                # (E, D, H)
    w2c = jnp.swapaxes(w2, 1, 2).astype(compute_dtype)                # (E, H, D)

    y_routed = pl.pallas_call(
        _expert_ffn_kernel,
        out_shape=jax.ShapeDtypeStruct((P, D), x.dtype),
        grid_spec=pltpu.PrefetchScalarGridSpec(
            num_scalar_prefetch=1,
            grid=(n_tiles, H // th),
            in_specs=[
                pl.BlockSpec((tm, D), lambda i, h, te: (i, 0)),            # x
                pl.BlockSpec((1, D, th), lambda i, h, te: (te[i], 0, h)),  # w1
                pl.BlockSpec((1, D, th), lambda i, h, te: (te[i], 0, h)),  # w3
                pl.BlockSpec((1, th, D), lambda i, h, te: (te[i], h, 0)),  # w2
            ],
            out_specs=pl.BlockSpec((tm, D), lambda i, h, te: (i, 0)),
            scratch_shapes=[pltpu.VMEM((tm, D), jnp.float32)],
        ),
        compiler_params=pltpu.CompilerParams(
            dimension_semantics=("parallel", "arbitrary"),
            vmem_limit_bytes=vmem_limit),
    )(tile_expert, x_routed, w1c, w3c, w2c)

    # ---- combine: scale by routing weight, scatter-add back to token rows ----
    out = jnp.zeros((T, D), jnp.float32).at[padded_token].add(
        padded_w[:, None] * y_routed.astype(jnp.float32))
    return out.astype(x.dtype)


# ---------------------------------------------------------------------------
# Pure-JAX reference mirroring the PyTorch loop semantics
# ---------------------------------------------------------------------------
def moe_reference(x, gate_w, w1, w2, w3, num_experts_per_tok):
    gate_logits = x @ gate_w.T
    topk_vals, topk_idx = jax.lax.top_k(gate_logits, num_experts_per_tok)
    topk_w = jax.nn.softmax(topk_vals.astype(jnp.float32), axis=1).astype(x.dtype)
    results = jnp.zeros_like(x)
    E = w1.shape[0]
    for i in range(E):
        h1 = x @ w1[i].T
        h3 = x @ w3[i].T
        y = (jax.nn.silu(h1) * h3) @ w2[i].T
        w_i = jnp.sum(jnp.where(topk_idx == i, topk_w, 0.0), axis=1, keepdims=True)
        results = results + w_i * y
    return results


if __name__ == "__main__":
    # tokens = batch*seq = 2*128 = 256, model dim 128, expert hidden 1024,
    # 4 experts, top-2 routing.  max_token_tile=128 so multiple routed token
    # tiles per expert, partial (padded) tiles, and both hidden tiles are all
    # exercised while staying small.
    batch, seq, D, H, E, K = 2, 128, 128, 1024, 4, 2
    T = batch * seq

    key = jax.random.PRNGKey(0)
    kx, kg, k1, k2, k3 = jax.random.split(key, 5)
    x = jax.random.normal(kx, (T, D), dtype=jnp.float32)
    gate_w = jax.random.normal(kg, (E, D), dtype=jnp.float32) * 0.1    # nn.Linear(D, E)
    w1 = jax.random.normal(k1, (E, H, D), dtype=jnp.float32) * 0.1     # nn.Linear(D, H)
    w2 = jax.random.normal(k2, (E, D, H), dtype=jnp.float32) * 0.1     # nn.Linear(H, D)
    w3 = jax.random.normal(k3, (E, H, D), dtype=jnp.float32) * 0.1     # nn.Linear(D, H)

    ref = moe_reference(x, gate_w, w1, w2, w3, K)

    # f32 compute path: tight structural check vs the reference.
    run_f32 = jax.jit(functools.partial(
        moe_forward, num_experts_per_tok=K, compute_dtype=jnp.float32,
        max_token_tile=128))
    out_f32 = run_f32(x, gate_w, w1, w2, w3)
    jax.block_until_ready(out_f32)
    assert out_f32.shape == (T, D) and out_f32.dtype == x.dtype
    assert jnp.allclose(out_f32, ref, atol=1e-3, rtol=1e-3), "f32 mismatch vs reference"

    # bf16 MXU path (production default): loose tolerance.
    run_bf16 = jax.jit(functools.partial(
        moe_forward, num_experts_per_tok=K, compute_dtype=jnp.bfloat16,
        max_token_tile=128))
    out_bf16 = run_bf16(x, gate_w, w1, w2, w3)
    jax.block_until_ready(out_bf16)
    assert out_bf16.shape == (T, D) and out_bf16.dtype == x.dtype
    assert jnp.allclose(out_bf16, ref, atol=2e-1, rtol=2e-1), "bf16 mismatch vs reference"

    print("KERNEL_OK")
</pallas_src>

<mosaic_0001>
module attributes {stable_mosaic.version = 11 : i64} {
  func.func private @main(%arg0: i32) attributes {dimension_semantics = [#tpu.dimension_semantics<core_parallel>], iteration_bounds = array<i64: 2>, tpu.core_type = #tpu.core_type<sc_scalar_subcore>, window_params = []} {
    return
  }
}

module attributes {stable_mosaic.version = 11 : i64} {
  func.func private @main(%arg0: i32) attributes {dimension_semantics = [#tpu.dimension_semantics<core_parallel>], iteration_bounds = array<i64: 2>, tpu.core_type = #tpu.core_type<sc_scalar_subcore>, window_params = []} {
    return
  }
}

module attributes {stable_mosaic.version = 11 : i64} {
  func.func @_expert_ffn_kernel(%arg0: i32, %arg1: i32, %arg2: memref<8xi32, #tpu.memory_space<smem>>, %arg3: memref<128x128xf32, #tpu.memory_space<vmem>>, %arg4: memref<1x128x512xf32, #tpu.memory_space<vmem>>, %arg5: memref<1x128x512xf32, #tpu.memory_space<vmem>>, %arg6: memref<1x512x128xf32, #tpu.memory_space<vmem>>, %arg7: memref<128x128xf32, #tpu.memory_space<vmem>>, %arg8: memref<128x128xf32, #tpu.memory_space<vmem>>) attributes {dimension_semantics = [#tpu.dimension_semantics<parallel>, #tpu.dimension_semantics<arbitrary>], iteration_bounds = array<i64: 8, 2>, scalar_prefetch = 1 : i64, scratch_operands = 1 : i64, tpu.core_type = #tpu.core_type<tc>, window_params = [{transform_indices = @transform_0, window_bounds = array<i64: 128, 128>}, {transform_indices = @transform_1, window_bounds = array<i64: 1, 128, 512>}, {transform_indices = @transform_2, window_bounds = array<i64: 1, 128, 512>}, {transform_indices = @transform_3, window_bounds = array<i64: 1, 512, 128>}, {transform_indices = @transform_4, window_bounds = array<i64: 128, 128>}]} {
    %c0_i32 = arith.constant 0 : i32
    %0 = arith.cmpi eq, %arg1, %c0_i32 : i32
    %1 = arith.extui %0 : i1 to i32
    %c0_i32_0 = arith.constant 0 : i32
    %2 = arith.cmpi ne, %1, %c0_i32_0 : i32
    scf.if %2 {
      %cst_19 = arith.constant 0.000000e+00 : f32
      %26 = vector.broadcast %cst_19 : f32 to vector<128x128xf32>
      %c0_20 = arith.constant 0 : index
      %c0_21 = arith.constant 0 : index
      %27 = vector.load %arg8[%c0_20, %c0_21] : memref<128x128xf32, #tpu.memory_space<vmem>>, vector<128x128xf32>
      tpu.vector_store %arg8[%c0_20, %c0_21], %26 {strides = array<i32>} : memref<128x128xf32, #tpu.memory_space<vmem>>, vector<128x128xf32>,
    } else {
    }
    %c0 = arith.constant 0 : index
    %c0_1 = arith.constant 0 : index
    %3 = vector.load %arg3[%c0, %c0_1] : memref<128x128xf32, #tpu.memory_space<vmem>>, vector<128x128xf32>
    %c0_2 = arith.constant 0 : index
    %c0_3 = arith.constant 0 : index
    %c0_4 = arith.constant 0 : index
    %4 = vector.load %arg4[%c0_2, %c0_3, %c0_4] : memref<1x128x512xf32, #tpu.memory_space<vmem>>, vector<1x128x512xf32>
    %5 = vector.shape_cast %4 : vector<1x128x512xf32> to vector<128x512xf32>
    %c0_5 = arith.constant 0 : index
    %c0_6 = arith.constant 0 : index
    %c0_7 = arith.constant 0 : index
    %6 = vector.load %arg5[%c0_5, %c0_6, %c0_7] : memref<1x128x512xf32, #tpu.memory_space<vmem>>, vector<1x128x512xf32>
    %7 = vector.shape_cast %6 : vector<1x128x512xf32> to vector<128x512xf32>
    %c0_8 = arith.constant 0 : index
    %c0_9 = arith.constant 0 : index
    %c0_10 = arith.constant 0 : index
    %8 = vector.load %arg6[%c0_8, %c0_9, %c0_10] : memref<1x512x128xf32, #tpu.memory_space<vmem>>, vector<1x512x128xf32>
    %9 = vector.shape_cast %8 : vector<1x512x128xf32> to vector<512x128xf32>
    %cst = arith.constant dense<0.000000e+00> : vector<128x512xf32>
    %10 = tpu.matmul %3, %5, %cst {dimension_numbers = #tpu.dot_dimension_numbers<[1], [0], [0], [1], [0, 0, 1, 1], [], []>} : vector<128x128xf32>, vector<128x512xf32>, vector<128x512xf32> -> vector<128x512xf32>
    %cst_11 = arith.constant dense<0.000000e+00> : vector<128x512xf32>
    %11 = tpu.matmul %3, %7, %cst_11 {dimension_numbers = #tpu.dot_dimension_numbers<[1], [0], [0], [1], [0, 0, 1, 1], [], []>} : vector<128x128xf32>, vector<128x512xf32>, vector<128x512xf32> -> vector<128x512xf32>
    %12 = arith.negf %10 : vector<128x512xf32>
    %13 = math.exp %12 : vector<128x512xf32>
    %cst_12 = arith.constant 1.000000e+00 : f32
    %14 = vector.broadcast %cst_12 : f32 to vector<128x512xf32>
    %15 = arith.addf %14, %13 : vector<128x512xf32>
    %16 = arith.divf %14, %15 : vector<128x512xf32>
    %17 = arith.mulf %10, %16 : vector<128x512xf32>
    %18 = arith.mulf %17, %11 : vector<128x512xf32>
    %c0_13 = arith.constant 0 : index
    %c0_14 = arith.constant 0 : index
    %19 = vector.load %arg8[%c0_13, %c0_14] : memref<128x128xf32, #tpu.memory_space<vmem>>, vector<128x128xf32>
    %cst_15 = arith.constant dense<0.000000e+00> : vector<128x128xf32>
    %20 = tpu.matmul %18, %9, %cst_15 {dimension_numbers = #tpu.dot_dimension_numbers<[1], [0], [0], [1], [0, 0, 1, 1], [], []>} : vector<128x512xf32>, vector<512x128xf32>, vector<128x128xf32> -> vector<128x128xf32>
    %21 = arith.addf %19, %20 : vector<128x128xf32>
    %c0_16 = arith.constant 0 : index
    %c0_17 = arith.constant 0 : index
    %22 = vector.load %arg8[%c0_16, %c0_17] : memref<128x128xf32, #tpu.memory_space<vmem>>, vector<128x128xf32>
    tpu.vector_store %arg8[%c0_16, %c0_17], %21 {strides = array<i32>} : memref<128x128xf32, #tpu.memory_space<vmem>>, vector<128x128xf32>,
    %c1_i32 = arith.constant 1 : i32
    %23 = arith.cmpi eq, %arg1, %c1_i32 : i32
    %24 = arith.extui %23 : i1 to i32
    %c0_i32_18 = arith.constant 0 : i32
    %25 = arith.cmpi ne, %24, %c0_i32_18 : i32
    scf.if %25 {
      %c0_19 = arith.constant 0 : index
      %c0_20 = arith.constant 0 : index
      %26 = vector.load %arg8[%c0_19, %c0_20] : memref<128x128xf32, #tpu.memory_space<vmem>>, vector<128x128xf32>
      %c0_21 = arith.constant 0 : index
      %c0_22 = arith.constant 0 : index
      %27 = vector.load %arg7[%c0_21, %c0_22] : memref<128x128xf32, #tpu.memory_space<vmem>>, vector<128x128xf32>
      tpu.vector_store %arg7[%c0_21, %c0_22], %26 {strides = array<i32>} : memref<128x128xf32, #tpu.memory_space<vmem>>, vector<128x128xf32>,
    } else {
    }
    return
  }
  func.func @transform_0(%arg0: i32, %arg1: i32, %arg2: memref<8xi32, #tpu.memory_space<smem>>) -> (i32, i32) {
    %c0_i32 = arith.constant 0 : i32
    %c0_i32_0 = arith.constant 0 : i32
    return %arg0, %c0_i32 : i32, i32
  }
  func.func @transform_1(%arg0: i32, %arg1: i32, %arg2: memref<8xi32, #tpu.memory_space<smem>>) -> (i32, i32, i32) {
    %0 = arith.index_cast %arg0 : i32 to index
    %1 = memref.load %arg2[%0] : memref<8xi32, #tpu.memory_space<smem>>
    %c0_i32 = arith.constant 0 : i32
    %c0_i32_0 = arith.constant 0 : i32
    return %1, %c0_i32, %arg1 : i32, i32, i32
  }
  func.func @transform_2(%arg0: i32, %arg1: i32, %arg2: memref<8xi32, #tpu.memory_space<smem>>) -> (i32, i32, i32) {
    %0 = arith.index_cast %arg0 : i32 to index
    %1 = memref.load %arg2[%0] : memref<8xi32, #tpu.memory_space<smem>>
    %c0_i32 = arith.constant 0 : i32
    %c0_i32_0 = arith.constant 0 : i32
    return %1, %c0_i32, %arg1 : i32, i32, i32
  }
  func.func @transform_3(%arg0: i32, %arg1: i32, %arg2: memref<8xi32, #tpu.memory_space<smem>>) -> (i32, i32, i32) {
    %0 = arith.index_cast %arg0 : i32 to index
    %1 = memref.load %arg2[%0] : memref<8xi32, #tpu.memory_space<smem>>
    %c0_i32 = arith.constant 0 : i32
    %c0_i32_0 = arith.constant 0 : i32
    return %1, %arg1, %c0_i32 : i32, i32, i32
  }
  func.func @transform_4(%arg0: i32, %arg1: i32, %arg2: memref<8xi32, #tpu.memory_space<smem>>) -> (i32, i32) {
    %c0_i32 = arith.constant 0 : i32
    %c0_i32_0 = arith.constant 0 : i32
    return %arg0, %c0_i32 : i32, i32
  }
}

</mosaic_0001>

<bundles_post_ra>
// kernel: moe_forward.1
= control target key start
LH: loop header
LB: loop body
LE: loop exit
PB: predicated region body
PF: predicated region fallthrough
CT: control target
= control target key end

     0   :  { %s4578_s0 = inlined_call_operand.vmem [shape: s32[8], index: 0, kind: input, shape index: {}]   ;;  %s4579_s1 = inlined_call_operand.vmem [shape: f32[1024,128], index: 1, kind: input, shape index: {}]   ;;  %s4580_s2 = inlined_call_operand.vmem [shape: f32[4,128,1024], index: 2, kind: input, shape index: {}]   ;;  %s4581_s3 = inlined_call_operand.vmem [shape: f32[4,128,1024], index: 3, kind: input, shape index: {}]   ;;  %s4582_s4 = inlined_call_operand.vmem [shape: f32[4,1024,128], index: 4, kind: input, shape index: {}]   ;;  %s4583_s5 = inlined_call_operand.vmem [shape: f32[1024,128], index: 5, kind: output, shape index: {}]  }
   0x1   :  { %4625 = sst [smem:[#allocation49_spill]] %s4580_s2  ;;  %s10_s20 = sshll.u32 %s4578_s0, 4  ;;  %s11_s20 = int_to_ptr.vmem [resolvable:$true] %s10_s20 }
   0x2   :  { %s3272_s21 = scalar_lea.vmem %s11_s20, 16  ;;  %p3277_p1 = scmp.lt.s32.totalorder %s11_s20, %s11_s20 }
   0x3   :  { %p3273_p0 = scmp.ne.s32.totalorder %s11_s20, %s3272_s21  ;;  %p3278_p2 = scmp.lt.s32.totalorder %s3272_s21, %s3272_s21 }
   0x5   :  { %p3279_p3 = por %p3278_p2, %p3277_p1 }
   0x7   :  { %p3280_p4 = pnand %p3279_p3, %p3273_p0 }
   0x9   :  { %3283 = shalt.err (!%p3280_p4)  }
   0xa   :  { %s3358_s22 = smov [#allocation4]  }
   0xb   :  { %13 = dma.vmem_to_smem %s11_s20, 16, %s3358_s22, [#allocation3] }
   0xc   :  { %3320 = dma.done.wait [#allocation3], 16 }
   0xd   :  { %3321 = vsyncadd [#allocation3], 4294967280 }
   0xe   :  { %15 = sfence }
   0xf   :  { %s3394_s23 = smov 0   ;;  %s3396_s24 = smov 0  }
  0x10   :  { %s3398_s25 = smov 0   ;;  %s3400_s0 = smov 0  }
  0x11   :  { %s3402_s26 = smov 0   ;;  %s3404_s27 = smov 0  }
  0x12   :  { %s3406_s28 = smov 0   ;;  %s3408_s29 = smov 0  }
  0x13   :  { %s3410_s30 = smov 0  }
  0x14 LB: > { %s30_s6 = sadd.s32 1, %s3348_s28  ;;  %s33_s7 = sadd.s32 1, %s3352_s29  ;;  %s3356_s30 = sphi %s3410_s30, %s21_s30   ;;  %s3352_s29 = sphi %s3408_s29, %s4718_s29   ;;  %s3348_s28 = sphi %s3406_s28, %s4717_s28   ;;  %s3344_s27 = sphi %s3404_s27, %s4716_s27   ;;  %s3340_s26 = sphi %s3402_s26, %s4715_s26   ;;  %s3336_s0 = sphi %s3400_s0, %s4714_s0   ;;  %s3332_s25 = sphi %s3398_s25, %s4713_s25   ;;  %s3328_s24 = sphi %s3396_s24, %s4712_s24   ;;  %s3324_s23 = sphi %s3394_s23, %s4711_s23  }
  0x15   : > { %p31_p5 = scmp.ge.s32.totalorder %s30_s6, 2  ;;  %p77_p6 = scmp.ne.s32.totalorder %s3336_s0, %s3332_s25 }
  0x16   : > { %p78_p7 = scmp.eq.s32.totalorder %s3356_s30, 0  ;;  %s63_s8 = sld [smem:[#allocation4 + %s3352_s29]] }
  0x17   : > { %s4720_s6 = smov (%p31_p5, %s30_s6), 0  ;;  %s4722_s7 = smov (!%p31_p5, %s33_s7), %s3352_s29 }
  0x18   : > { %p35_p8 = scmp.ge.s32.totalorder %s4722_s7, 8  ;;  %p3448_p9 = por %p78_p7, %p77_p6 }
  0x19   : > { %s93_s10 = sld [smem:[#allocation4 + %s3352_s29]]  ;;  %p107_p10 = scmp.ne.s32.totalorder %s3328_s24, %s3324_s23 }
  0x1a   : > { %s4724_s7 = smov (%p35_p8, %s4722_s7), 0  ;;  %s66_s14 = ssub.s32 %s3348_s28, %s4720_s6 }
  0x1b   : > { %4627 = sst [smem:[#allocation8_spill]] %s4724_s7  ;;  %p3459_p11 = por %p107_p10, %p78_p7 }
  0x1c   : > { %s64_s11 = sld [smem:[#allocation4 + %s4724_s7]]  ;;  %s70_s15 = sadd.s32 1, %s3336_s0 }
  0x1d   : > { %s94_s12 = sld [smem:[#allocation4 + %s4724_s7]]  ;;  %s100_s16 = sadd.s32 1, %s3328_s24 }
  0x1e   : > { %p2502_p0 = scmp.ge.s32.totalorder %s3356_s30, 16 }
  0x21   : > { %189 = sbr.rel (%p2502_p0) target bundleno = 126 (0x7e), region = 16 }
  0x22   : > { %s65_s17 = ssub.s32 %s63_s8, %s64_s11 }
  0x23   : > { %s95_s18 = ssub.s32 %s93_s10, %s94_s12  ;;  %s67_s19 = sor.u32 %s66_s14, %s65_s17 }
  0x24   : > { %s97_s20 = sor.u32 %s95_s18, %s66_s14  ;;  %p68_p12 = scmp.eq.s32.totalorder %s67_s19, 0 }
  0x25   : > { %p98_p13 = scmp.eq.s32.totalorder %s97_s20, 0 }
  0x26   : > { %s3468_s21 = scalar_select %p68_p12, %s3336_s0, %s70_s15  }
  0x27   : > { %s3471_s22 = scalar_select %p98_p13, %s3328_s24, %s100_s16  }
  0x28   : > { %201 = sbr.rel (!%p3448_p9) target bundleno = 83 (0x53), region = 24  ;;  %s206_s7 = sld [smem:[#allocation4 + %s3352_s29]] (%p3448_p9) }
  0x29   : > { %s203_s8 = sand.u32 (%p3448_p9), 1, %s3336_s0   ;;  %s2504_s10 = sshll.u32 (%p3448_p9), %s3348_s28, 2 }
  0x2a   : > { %s2503_s11 = sshll.u32 (%p3448_p9), %s203_s8, 9  ;;  %s4629_s2 = sld [smem:[#allocation49_spill]] (%p3448_p9) }
  0x2e   : > { %s2505_s12 = sshll.u32 (%p3448_p9), %s206_s7, 7  ;;  %s3487_s7 = scalar_lea.vmem (%p3448_p9), [#allocation5], %s2503_s11 }
  0x2f   : > { %s209_s14 = sadd.s32 %s2505_s12, %s2504_s10 }
  0x30   : > { %s2506_s17 = sshll.u32 %s209_s14, 3 }
  0x31   : > { %s3482_s16 = scalar_lea.vmem %s4629_s2, %s2506_s17 }
  0x32   : > { %v224_v0 = vld [vmem:[%s3482_s16] sm:$0xff]  ;;  %v226_v1 = vld [vmem:[%s3482_s16 + $0x8] sm:$0xff]  ;;  %v228_v2 = vld [vmem:[%s3482_s16 + $0x10] sm:$0xff] }
  0x33   : > { %225 = vst [vmem:[%s3487_s7] sm:$0xff] %v224_v0  ;;  %227 = vst [vmem:[%s3487_s7 + $0x8] sm:$0xff] %v226_v1  ;;  %v230_v3 = vld [vmem:[%s3482_s16 + $0x18] sm:$0xff]  ;;  %v232_v4 = vld [vmem:[%s3482_s16 + $0x40] sm:$0xff] }
  0x34   : > { %229 = vst [vmem:[%s3487_s7 + $0x10] sm:$0xff] %v228_v2  ;;  %v234_v5 = vld [vmem:[%s3482_s16 + $0x48] sm:$0xff]  ;;  %231 = vst [vmem:[%s3487_s7 + $0x18] sm:$0xff] %v230_v3  ;;  %v236_v6 = vld [vmem:[%s3482_s16 + $0x50] sm:$0xff] }
  0x35   : > { %233 = vst [vmem:[%s3487_s7 + $0x20] sm:$0xff] %v232_v4  ;;  %235 = vst [vmem:[%s3487_s7 + $0x28] sm:$0xff] %v234_v5  ;;  %v238_v7 = vld [vmem:[%s3482_s16 + $0x58] sm:$0xff]  ;;  %v240_v8 = vld [vmem:[%s3482_s16 + $0x80] sm:$0xff] }
  0x36   : > { %237 = vst [vmem:[%s3487_s7 + $0x30] sm:$0xff] %v236_v6  ;;  %239 = vst [vmem:[%s3487_s7 + $0x38] sm:$0xff] %v238_v7  ;;  %v242_v9 = vld [vmem:[%s3482_s16 + $0x88] sm:$0xff]  ;;  %v244_v10 = vld [vmem:[%s3482_s16 + $0x90] sm:$0xff] }
  0x37   : > { %241 = vst [vmem:[%s3487_s7 + $0x40] sm:$0xff] %v240_v8  ;;  %v246_v11 = vld [vmem:[%s3482_s16 + $0x98] sm:$0xff]  ;;  %243 = vst [vmem:[%s3487_s7 + $0x48] sm:$0xff] %v242_v9  ;;  %v248_v12 = vld [vmem:[%s3482_s16 + $0xc0] sm:$0xff] }
  0x38   : > { %245 = vst [vmem:[%s3487_s7 + $0x50] sm:$0xff] %v244_v10  ;;  %247 = vst [vmem:[%s3487_s7 + $0x58] sm:$0xff] %v246_v11  ;;  %v250_v13 = vld [vmem:[%s3482_s16 + $0xc8] sm:$0xff]  ;;  %v252_v14 = vld [vmem:[%s3482_s16 + $0xd0] sm:$0xff] }
  0x39   : > { %249 = vst [vmem:[%s3487_s7 + $0x60] sm:$0xff] %v248_v12  ;;  %251 = vst [vmem:[%s3487_s7 + $0x68] sm:$0xff] %v250_v13  ;;  %v254_v15 = vld [vmem:[%s3482_s16 + $0xd8] sm:$0xff]  ;;  %v256_v16 = vld [vmem:[%s3482_s16 + $0x100] sm:$0xff] }
  0x3a   : > { %253 = vst [vmem:[%s3487_s7 + $0x70] sm:$0xff] %v252_v14  ;;  %v258_v17 = vld [vmem:[%s3482_s16 + $0x108] sm:$0xff]  ;;  %255 = vst [vmem:[%s3487_s7 + $0x78] sm:$0xff] %v254_v15  ;;  %v260_v18 = vld [vmem:[%s3482_s16 + $0x110] sm:$0xff] }
  0x3b   : > { %257 = vst [vmem:[%s3487_s7 + $0x80] sm:$0xff] %v256_v16  ;;  %259 = vst [vmem:[%s3487_s7 + $0x88] sm:$0xff] %v258_v17  ;;  %v262_v19 = vld [vmem:[%s3482_s16 + $0x118] sm:$0xff]  ;;  %v264_v20 = vld [vmem:[%s3482_s16 + $0x140] sm:$0xff] }
  0x3c   : > { %261 = vst [vmem:[%s3487_s7 + $0x90] sm:$0xff] %v260_v18  ;;  %263 = vst [vmem:[%s3487_s7 + $0x98] sm:$0xff] %v262_v19  ;;  %v266_v21 = vld [vmem:[%s3482_s16 + $0x148] sm:$0xff]  ;;  %v268_v22 = vld [vmem:[%s3482_s16 + $0x150] sm:$0xff] }
  0x3d   : > { %265 = vst [vmem:[%s3487_s7 + $0xa0] sm:$0xff] %v264_v20  ;;  %v270_v23 = vld [vmem:[%s3482_s16 + $0x158] sm:$0xff]  ;;  %267 = vst [vmem:[%s3487_s7 + $0xa8] sm:$0xff] %v266_v21  ;;  %v272_v24 = vld [vmem:[%s3482_s16 + $0x180] sm:$0xff] }
  0x3e   : > { %269 = vst [vmem:[%s3487_s7 + $0xb0] sm:$0xff] %v268_v22  ;;  %271 = vst [vmem:[%s3487_s7 + $0xb8] sm:$0xff] %v270_v23  ;;  %v274_v25 = vld [vmem:[%s3482_s16 + $0x188] sm:$0xff]  ;;  %v276_v26 = vld [vmem:[%s3482_s16 + $0x190] sm:$0xff] }
  0x3f   : > { %273 = vst [vmem:[%s3487_s7 + $0xc0] sm:$0xff] %v272_v24  ;;  %275 = vst [vmem:[%s3487_s7 + $0xc8] sm:$0xff] %v274_v25  ;;  %v278_v27 = vld [vmem:[%s3482_s16 + $0x198] sm:$0xff]  ;;  %v280_v28 = vld [vmem:[%s3482_s16 + $0x1c0] sm:$0xff] }
  0x40   : > { %277 = vst [vmem:[%s3487_s7 + $0xd0] sm:$0xff] %v276_v26  ;;  %v282_v29 = vld [vmem:[%s3482_s16 + $0x1c8] sm:$0xff]  ;;  %279 = vst [vmem:[%s3487_s7 + $0xd8] sm:$0xff] %v278_v27  ;;  %v284_v30 = vld [vmem:[%s3482_s16 + $0x1d0] sm:$0xff] }
  0x41   : > { %281 = vst [vmem:[%s3487_s7 + $0xe0] sm:$0xff] %v280_v28  ;;  %283 = vst [vmem:[%s3487_s7 + $0xe8] sm:$0xff] %v282_v29  ;;  %v286_v31 = vld [vmem:[%s3482_s16 + $0x1d8] sm:$0xff]  ;;  %v288_v32 = vld [vmem:[%s3482_s16 + $0x200] sm:$0xff] }
  0x42   : > { %285 = vst [vmem:[%s3487_s7 + $0xf0] sm:$0xff] %v284_v30  ;;  %287 = vst [vmem:[%s3487_s7 + $0xf8] sm:$0xff] %v286_v31  ;;  %v290_v33 = vld [vmem:[%s3482_s16 + $0x208] sm:$0xff]  ;;  %v292_v34 = vld [vmem:[%s3482_s16 + $0x210] sm:$0xff] }
  0x43   : > { %289 = vst [vmem:[%s3487_s7 + $0x100] sm:$0xff] %v288_v32  ;;  %v294_v35 = vld [vmem:[%s3482_s16 + $0x218] sm:$0xff]  ;;  %291 = vst [vmem:[%s3487_s7 + $0x108] sm:$0xff] %v290_v33  ;;  %v296_v36 = vld [vmem:[%s3482_s16 + $0x240] sm:$0xff] }
  0x44   : > { %293 = vst [vmem:[%s3487_s7 + $0x110] sm:$0xff] %v292_v34  ;;  %295 = vst [vmem:[%s3487_s7 + $0x118] sm:$0xff] %v294_v35  ;;  %v298_v37 = vld [vmem:[%s3482_s16 + $0x248] sm:$0xff]  ;;  %v300_v38 = vld [vmem:[%s3482_s16 + $0x250] sm:$0xff] }
  0x45   : > { %297 = vst [vmem:[%s3487_s7 + $0x120] sm:$0xff] %v296_v36  ;;  %299 = vst [vmem:[%s3487_s7 + $0x128] sm:$0xff] %v298_v37  ;;  %v302_v39 = vld [vmem:[%s3482_s16 + $0x258] sm:$0xff]  ;;  %v304_v40 = vld [vmem:[%s3482_s16 + $0x280] sm:$0xff] }
  0x46   : > { %301 = vst [vmem:[%s3487_s7 + $0x130] sm:$0xff] %v300_v38  ;;  %v306_v41 = vld [vmem:[%s3482_s16 + $0x288] sm:$0xff]  ;;  %303 = vst [vmem:[%s3487_s7 + $0x138] sm:$0xff] %v302_v39  ;;  %v308_v42 = vld [vmem:[%s3482_s16 + $0x290] sm:$0xff] }
  0x47   : > { %305 = vst [vmem:[%s3487_s7 + $0x140] sm:$0xff] %v304_v40  ;;  %307 = vst [vmem:[%s3487_s7 + $0x148] sm:$0xff] %v306_v41  ;;  %v310_v43 = vld [vmem:[%s3482_s16 + $0x298] sm:$0xff]  ;;  %v312_v44 = vld [vmem:[%s3482_s16 + $0x2c0] sm:$0xff] }
  0x48   : > { %309 = vst [vmem:[%s3487_s7 + $0x150] sm:$0xff] %v308_v42  ;;  %311 = vst [vmem:[%s3487_s7 + $0x158] sm:$0xff] %v310_v43  ;;  %v314_v45 = vld [vmem:[%s3482_s16 + $0x2c8] sm:$0xff]  ;;  %v316_v46 = vld [vmem:[%s3482_s16 + $0x2d0] sm:$0xff] }
  0x49   : > { %313 = vst [vmem:[%s3487_s7 + $0x160] sm:$0xff] %v312_v44  ;;  %v318_v47 = vld [vmem:[%s3482_s16 + $0x2d8] sm:$0xff]  ;;  %315 = vst [vmem:[%s3487_s7 + $0x168] sm:$0xff] %v314_v45  ;;  %v320_v48 = vld [vmem:[%s3482_s16 + $0x300] sm:$0xff] }
  0x4a   : > { %317 = vst [vmem:[%s3487_s7 + $0x170] sm:$0xff] %v316_v46  ;;  %319 = vst [vmem:[%s3487_s7 + $0x178] sm:$0xff] %v318_v47  ;;  %v322_v49 = vld [vmem:[%s3482_s16 + $0x308] sm:$0xff]  ;;  %v324_v50 = vld [vmem:[%s3482_s16 + $0x310] sm:$0xff] }
  0x4b   : > { %321 = vst [vmem:[%s3487_s7 + $0x180] sm:$0xff] %v320_v48  ;;  %323 = vst [vmem:[%s3487_s7 + $0x188] sm:$0xff] %v322_v49  ;;  %v326_v51 = vld [vmem:[%s3482_s16 + $0x318] sm:$0xff]  ;;  %v328_v52 = vld [vmem:[%s3482_s16 + $0x340] sm:$0xff] }
  0x4c   : > { %325 = vst [vmem:[%s3487_s7 + $0x190] sm:$0xff] %v324_v50  ;;  %v330_v53 = vld [vmem:[%s3482_s16 + $0x348] sm:$0xff]  ;;  %327 = vst [vmem:[%s3487_s7 + $0x198] sm:$0xff] %v326_v51  ;;  %v332_v54 = vld [vmem:[%s3482_s16 + $0x350] sm:$0xff] }
  0x4d   : > { %329 = vst [vmem:[%s3487_s7 + $0x1a0] sm:$0xff] %v328_v52  ;;  %331 = vst [vmem:[%s3487_s7 + $0x1a8] sm:$0xff] %v330_v53  ;;  %v334_v55 = vld [vmem:[%s3482_s16 + $0x358] sm:$0xff]  ;;  %v336_v56 = vld [vmem:[%s3482_s16 + $0x380] sm:$0xff] }
  0x4e   : > { %333 = vst [vmem:[%s3487_s7 + $0x1b0] sm:$0xff] %v332_v54  ;;  %335 = vst [vmem:[%s3487_s7 + $0x1b8] sm:$0xff] %v334_v55  ;;  %v338_v57 = vld [vmem:[%s3482_s16 + $0x388] sm:$0xff]  ;;  %v340_v58 = vld [vmem:[%s3482_s16 + $0x390] sm:$0xff] }
  0x4f   : > { %337 = vst [vmem:[%s3487_s7 + $0x1c0] sm:$0xff] %v336_v56  ;;  %v342_v59 = vld [vmem:[%s3482_s16 + $0x398] sm:$0xff]  ;;  %339 = vst [vmem:[%s3487_s7 + $0x1c8] sm:$0xff] %v338_v57  ;;  %v344_v60 = vld [vmem:[%s3482_s16 + $0x3c0] sm:$0xff] }
  0x50   : > { %341 = vst [vmem:[%s3487_s7 + $0x1d0] sm:$0xff] %v340_v58  ;;  %343 = vst [vmem:[%s3487_s7 + $0x1d8] sm:$0xff] %v342_v59  ;;  %v346_v61 = vld [vmem:[%s3482_s16 + $0x3c8] sm:$0xff]  ;;  %v348_v62 = vld [vmem:[%s3482_s16 + $0x3d0] sm:$0xff] }
  0x51   : > { %345 = vst [vmem:[%s3487_s7 + $0x1e0] sm:$0xff] %v344_v60  ;;  %347 = vst [vmem:[%s3487_s7 + $0x1e8] sm:$0xff] %v346_v61  ;;  %v350_v63 = vld [vmem:[%s3482_s16 + $0x3d8] sm:$0xff] }
  0x52   : > { %349 = vst [vmem:[%s3487_s7 + $0x1f0] sm:$0xff] %v348_v62  ;;  %351 = vst [vmem:[%s3487_s7 + $0x1f8] sm:$0xff] %v350_v63 }
  0x53 PF: > { %357 = sbr.rel (!%p3459_p11) target bundleno = 126 (0x7e), region = 47  ;;  %s362_s9 = sld [smem:[#allocation4 + %s3352_s29]] (%p3459_p11) }
  0x54   : > { %s359_s19 = sand.u32 (%p3459_p11), 1, %s3328_s24   ;;  %s2508_s20 = sshll.u32 (%p3459_p11), %s3348_s28, 2 }
  0x55   : > { %s2507_s8 = sshll.u32 (%p3459_p11), %s359_s19, 9 }
  0x56   : > { %s3627_s13 = scalar_lea.vmem (%p3459_p11), [#allocation6], %s2507_s8 }
  0x59   : > { %s2509_s10 = sshll.u32 (%p3459_p11), %s362_s9, 7 }
  0x5a   : > { %s365_s11 = sadd.s32 %s2509_s10, %s2508_s20 }
  0x5b   : > { %s2510_s12 = sshll.u32 %s365_s11, 3 }
  0x5c   : > { %s3622_s15 = scalar_lea.vmem %s4581_s3, %s2510_s12 }
  0x5d   : > { %v380_v0 = vld [vmem:[%s3622_s15] sm:$0xff]  ;;  %v382_v1 = vld [vmem:[%s3622_s15 + $0x8] sm:$0xff]  ;;  %v384_v2 = vld [vmem:[%s3622_s15 + $0x10] sm:$0xff] }
  0x5e   : > { %381 = vst [vmem:[%s3627_s13] sm:$0xff] %v380_v0  ;;  %383 = vst [vmem:[%s3627_s13 + $0x8] sm:$0xff] %v382_v1  ;;  %v386_v3 = vld [vmem:[%s3622_s15 + $0x18] sm:$0xff]  ;;  %v388_v4 = vld [vmem:[%s3622_s15 + $0x40] sm:$0xff] }
  0x5f   : > { %385 = vst [vmem:[%s3627_s13 + $0x10] sm:$0xff] %v384_v2  ;;  %v390_v5 = vld [vmem:[%s3622_s15 + $0x48] sm:$0xff]  ;;  %387 = vst [vmem:[%s3627_s13 + $0x18] sm:$0xff] %v386_v3  ;;  %v392_v6 = vld [vmem:[%s3622_s15 + $0x50] sm:$0xff] }
  0x60   : > { %389 = vst [vmem:[%s3627_s13 + $0x20] sm:$0xff] %v388_v4  ;;  %391 = vst [vmem:[%s3627_s13 + $0x28] sm:$0xff] %v390_v5  ;;  %v394_v7 = vld [vmem:[%s3622_s15 + $0x58] sm:$0xff]  ;;  %v396_v8 = vld [vmem:[%s3622_s15 + $0x80] sm:$0xff] }
  0x61   : > { %393 = vst [vmem:[%s3627_s13 + $0x30] sm:$0xff] %v392_v6  ;;  %395 = vst [vmem:[%s3627_s13 + $0x38] sm:$0xff] %v394_v7  ;;  %v398_v9 = vld [vmem:[%s3622_s15 + $0x88] sm:$0xff]  ;;  %v400_v10 = vld [vmem:[%s3622_s15 + $0x90] sm:$0xff] }
  0x62   : > { %397 = vst [vmem:[%s3627_s13 + $0x40] sm:$0xff] %v396_v8  ;;  %v402_v11 = vld [vmem:[%s3622_s15 + $0x98] sm:$0xff]  ;;  %399 = vst [vmem:[%s3627_s13 + $0x48] sm:$0xff] %v398_v9  ;;  %v404_v12 = vld [vmem:[%s3622_s15 + $0xc0] sm:$0xff] }
  0x63   : > { %401 = vst [vmem:[%s3627_s13 + $0x50] sm:$0xff] %v400_v10  ;;  %403 = vst [vmem:[%s3627_s13 + $0x58] sm:$0xff] %v402_v11  ;;  %v406_v13 = vld [vmem:[%s3622_s15 + $0xc8] sm:$0xff]  ;;  %v408_v14 = vld [vmem:[%s3622_s15 + $0xd0] sm:$0xff] }
  0x64   : > { %405 = vst [vmem:[%s3627_s13 + $0x60] sm:$0xff] %v404_v12  ;;  %407 = vst [vmem:[%s3627_s13 + $0x68] sm:$0xff] %v406_v13  ;;  %v410_v15 = vld [vmem:[%s3622_s15 + $0xd8] sm:$0xff]  ;;  %v412_v16 = vld [vmem:[%s3622_s15 + $0x100] sm:$0xff] }
  0x65   : > { %409 = vst [vmem:[%s3627_s13 + $0x70] sm:$0xff] %v408_v14  ;;  %v414_v17 = vld [vmem:[%s3622_s15 + $0x108] sm:$0xff]  ;;  %411 = vst [vmem:[%s3627_s13 + $0x78] sm:$0xff] %v410_v15  ;;  %v416_v18 = vld [vmem:[%s3622_s15 + $0x110] sm:$0xff] }
  0x66   : > { %413 = vst [vmem:[%s3627_s13 + $0x80] sm:$0xff] %v412_v16  ;;  %415 = vst [vmem:[%s3627_s13 + $0x88] sm:$0xff] %v414_v17  ;;  %v418_v19 = vld [vmem:[%s3622_s15 + $0x118] sm:$0xff]  ;;  %v420_v20 = vld [vmem:[%s3622_s15 + $0x140] sm:$0xff] }
  0x67   : > { %417 = vst [vmem:[%s3627_s13 + $0x90] sm:$0xff] %v416_v18  ;;  %419 = vst [vmem:[%s3627_s13 + $0x98] sm:$0xff] %v418_v19  ;;  %v422_v21 = vld [vmem:[%s3622_s15 + $0x148] sm:$0xff]  ;;  %v424_v22 = vld [vmem:[%s3622_s15 + $0x150] sm:$0xff] }
  0x68   : > { %421 = vst [vmem:[%s3627_s13 + $0xa0] sm:$0xff] %v420_v20  ;;  %v426_v23 = vld [vmem:[%s3622_s15 + $0x158] sm:$0xff]  ;;  %423 = vst [vmem:[%s3627_s13 + $0xa8] sm:$0xff] %v422_v21  ;;  %v428_v24 = vld [vmem:[%s3622_s15 + $0x180] sm:$0xff] }
  0x69   : > { %425 = vst [vmem:[%s3627_s13 + $0xb0] sm:$0xff] %v424_v22  ;;  %427 = vst [vmem:[%s3627_s13 + $0xb8] sm:$0xff] %v426_v23  ;;  %v430_v25 = vld [vmem:[%s3622_s15 + $0x188] sm:$0xff]  ;;  %v432_v26 = vld [vmem:[%s3622_s15 + $0x190] sm:$0xff] }
  0x6a   : > { %429 = vst [vmem:[%s3627_s13 + $0xc0] sm:$0xff] %v428_v24  ;;  %431 = vst [vmem:[%s3627_s13 + $0xc8] sm:$0xff] %v430_v25  ;;  %v434_v27 = vld [vmem:[%s3622_s15 + $0x198] sm:$0xff]  ;;  %v436_v28 = vld [vmem:[%s3622_s15 + $0x1c0] sm:$0xff] }
  0x6b   : > { %433 = vst [vmem:[%s3627_s13 + $0xd0] sm:$0xff] %v432_v26  ;;  %v438_v29 = vld [vmem:[%s3622_s15 + $0x1c8] sm:$0xff]  ;;  %435 = vst [vmem:[%s3627_s13 + $0xd8] sm:$0xff] %v434_v27  ;;  %v440_v30 = vld [vmem:[%s3622_s15 + $0x1d0] sm:$0xff] }
  0x6c   : > { %437 = vst [vmem:[%s3627_s13 + $0xe0] sm:$0xff] %v436_v28  ;;  %439 = vst [vmem:[%s3627_s13 + $0xe8] sm:$0xff] %v438_v29  ;;  %v442_v31 = vld [vmem:[%s3622_s15 + $0x1d8] sm:$0xff]  ;;  %v444_v32 = vld [vmem:[%s3622_s15 + $0x200] sm:$0xff] }
  0x6d   : > { %441 = vst [vmem:[%s3627_s13 + $0xf0] sm:$0xff] %v440_v30  ;;  %443 = vst [vmem:[%s3627_s13 + $0xf8] sm:$0xff] %v442_v31  ;;  %v446_v33 = vld [vmem:[%s3622_s15 + $0x208] sm:$0xff]  ;;  %v448_v34 = vld [vmem:[%s3622_s15 + $0x210] sm:$0xff] }
  0x6e   : > { %445 = vst [vmem:[%s3627_s13 + $0x100] sm:$0xff] %v444_v32  ;;  %v450_v35 = vld [vmem:[%s3622_s15 + $0x218] sm:$0xff]  ;;  %447 = vst [vmem:[%s3627_s13 + $0x108] sm:$0xff] %v446_v33  ;;  %v452_v36 = vld [vmem:[%s3622_s15 + $0x240] sm:$0xff] }
  0x6f   : > { %449 = vst [vmem:[%s3627_s13 + $0x110] sm:$0xff] %v448_v34  ;;  %451 = vst [vmem:[%s3627_s13 + $0x118] sm:$0xff] %v450_v35  ;;  %v454_v37 = vld [vmem:[%s3622_s15 + $0x248] sm:$0xff]  ;;  %v456_v38 = vld [vmem:[%s3622_s15 + $0x250] sm:$0xff] }
  0x70   : > { %453 = vst [vmem:[%s3627_s13 + $0x120] sm:$0xff] %v452_v36  ;;  %455 = vst [vmem:[%s3627_s13 + $0x128] sm:$0xff] %v454_v37  ;;  %v458_v39 = vld [vmem:[%s3622_s15 + $0x258] sm:$0xff]  ;;  %v460_v40 = vld [vmem:[%s3622_s15 + $0x280] sm:$0xff] }
  0x71   : > { %457 = vst [vmem:[%s3627_s13 + $0x130] sm:$0xff] %v456_v38  ;;  %v462_v41 = vld [vmem:[%s3622_s15 + $0x288] sm:$0xff]  ;;  %459 = vst [vmem:[%s3627_s13 + $0x138] sm:$0xff] %v458_v39  ;;  %v464_v42 = vld [vmem:[%s3622_s15 + $0x290] sm:$0xff] }
  0x72   : > { %461 = vst [vmem:[%s3627_s13 + $0x140] sm:$0xff] %v460_v40  ;;  %463 = vst [vmem:[%s3627_s13 + $0x148] sm:$0xff] %v462_v41  ;;  %v466_v43 = vld [vmem:[%s3622_s15 + $0x298] sm:$0xff]  ;;  %v468_v44 = vld [vmem:[%s3622_s15 + $0x2c0] sm:$0xff] }
  0x73   : > { %465 = vst [vmem:[%s3627_s13 + $0x150] sm:$0xff] %v464_v42  ;;  %467 = vst [vmem:[%s3627_s13 + $0x158] sm:$0xff] %v466_v43  ;;  %v470_v45 = vld [vmem:[%s3622_s15 + $0x2c8] sm:$0xff]  ;;  %v472_v46 = vld [vmem:[%s3622_s15 + $0x2d0] sm:$0xff] }
  0x74   : > { %469 = vst [vmem:[%s3627_s13 + $0x160] sm:$0xff] %v468_v44  ;;  %v474_v47 = vld [vmem:[%s3622_s15 + $0x2d8] sm:$0xff]  ;;  %471 = vst [vmem:[%s3627_s13 + $0x168] sm:$0xff] %v470_v45  ;;  %v476_v48 = vld [vmem:[%s3622_s15 + $0x300] sm:$0xff] }
  0x75   : > { %473 = vst [vmem:[%s3627_s13 + $0x170] sm:$0xff] %v472_v46  ;;  %475 = vst [vmem:[%s3627_s13 + $0x178] sm:$0xff] %v474_v47  ;;  %v478_v49 = vld [vmem:[%s3622_s15 + $0x308] sm:$0xff]  ;;  %v480_v50 = vld [vmem:[%s3622_s15 + $0x310] sm:$0xff] }
  0x76   : > { %477 = vst [vmem:[%s3627_s13 + $0x180] sm:$0xff] %v476_v48  ;;  %479 = vst [vmem:[%s3627_s13 + $0x188] sm:$0xff] %v478_v49  ;;  %v482_v51 = vld [vmem:[%s3622_s15 + $0x318] sm:$0xff]  ;;  %v484_v52 = vld [vmem:[%s3622_s15 + $0x340] sm:$0xff] }
  0x77   : > { %481 = vst [vmem:[%s3627_s13 + $0x190] sm:$0xff] %v480_v50  ;;  %v486_v53 = vld [vmem:[%s3622_s15 + $0x348] sm:$0xff]  ;;  %483 = vst [vmem:[%s3627_s13 + $0x198] sm:$0xff] %v482_v51  ;;  %v488_v54 = vld [vmem:[%s3622_s15 + $0x350] sm:$0xff] }
  0x78   : > { %485 = vst [vmem:[%s3627_s13 + $0x1a0] sm:$0xff] %v484_v52  ;;  %487 = vst [vmem:[%s3627_s13 + $0x1a8] sm:$0xff] %v486_v53  ;;  %v490_v55 = vld [vmem:[%s3622_s15 + $0x358] sm:$0xff]  ;;  %v492_v56 = vld [vmem:[%s3622_s15 + $0x380] sm:$0xff] }
  0x79   : > { %489 = vst [vmem:[%s3627_s13 + $0x1b0] sm:$0xff] %v488_v54  ;;  %491 = vst [vmem:[%s3627_s13 + $0x1b8] sm:$0xff] %v490_v55  ;;  %v494_v57 = vld [vmem:[%s3622_s15 + $0x388] sm:$0xff]  ;;  %v496_v58 = vld [vmem:[%s3622_s15 + $0x390] sm:$0xff] }
  0x7a   : > { %493 = vst [vmem:[%s3627_s13 + $0x1c0] sm:$0xff] %v492_v56  ;;  %v498_v59 = vld [vmem:[%s3622_s15 + $0x398] sm:$0xff]  ;;  %495 = vst [vmem:[%s3627_s13 + $0x1c8] sm:$0xff] %v494_v57  ;;  %v500_v60 = vld [vmem:[%s3622_s15 + $0x3c0] sm:$0xff] }
  0x7b   : > { %497 = vst [vmem:[%s3627_s13 + $0x1d0] sm:$0xff] %v496_v58  ;;  %499 = vst [vmem:[%s3627_s13 + $0x1d8] sm:$0xff] %v498_v59  ;;  %v502_v61 = vld [vmem:[%s3622_s15 + $0x3c8] sm:$0xff]  ;;  %v504_v62 = vld [vmem:[%s3622_s15 + $0x3d0] sm:$0xff] }
  0x7c   : > { %501 = vst [vmem:[%s3627_s13 + $0x1e0] sm:$0xff] %v500_v60  ;;  %503 = vst [vmem:[%s3627_s13 + $0x1e8] sm:$0xff] %v502_v61  ;;  %v506_v63 = vld [vmem:[%s3622_s15 + $0x3d8] sm:$0xff] }
  0x7d   : > { %505 = vst [vmem:[%s3627_s13 + $0x1f0] sm:$0xff] %v504_v62  ;;  %507 = vst [vmem:[%s3627_s13 + $0x1f8] sm:$0xff] %v506_v63 }
  0x7e PF: > { %p2511_p1 = scmp.ge.s32.totalorder %s3356_s30, 1  ;;  %p527_p2 = scmp.lt.s32.totalorder %s3356_s30, 17 }
  0x80   : > { %p528_p3 = pnand %p2511_p1, %p527_p2 }
  0x82   : > { %531 = sbr.rel (%p528_p3) target bundleno = 775 (0x307), region = 74 }
  0x89   : > { %s534_s18 = sand.u32 1, %s3332_s25   ;;  %s541_s16 = sand.u32 1, %s3324_s23  }
  0x8a   : > { %s2512_s7 = sshll.u32 %s534_s18, 9  ;;  %s2513_s9 = sshll.u32 %s541_s16, 9 }
  0x8b   : > { %s2514_s19 = sshll.u32 %s3344_s27, 4  ;;  %s595_s20 = sld [smem:[#allocation4 + %s3344_s27]] }
  0x8c   : > { %p586_p4 = scmp.lt.s32.totalorder %s2514_s19, 127  ;;  %s2516_s8 = sshll.u32 %s3340_s26, 6 }
  0x8d   : > { %p599_p5 = scmp.lt.s32.totalorder %s2516_s8, 127  ;;  %s3778_s11 = scalar_lea.vmem [#allocation6], %s2513_s9 }
  0x8e   : > { %s4726_s19 = smov (!%p586_p4, %s2514_s19), 127  ;;  %p2521_p7 = scmp.ne.s32.totalorder %s3340_s26, 0 }
  0x8f   : > { %s4728_s8 = smov (!%p599_p5, %s2516_s8), 127  ;;  %s2515_s10 = sshll.u32 %s4726_s19, 3  ;;  %v3359_v0 = vmov (!%p2521_p7), 0.0  }
  0x90   : > { %s3764_s14 = scalar_lea.vmem %s4579_s1, %s2515_s10  ;;  %s3769_s23 = scalar_lea.vmem %s4583_s5, %s2515_s10  ;;  %617 = vst [vmem:[#allocation2] sm:$0xff] (!%p2521_p7), %v3359_v0  ;;  %618 = vst [vmem:[#allocation2 + $0x8] sm:$0xff] (!%p2521_p7), %v3359_v0 }
  0x91   : > { %p597_p6 = scmp.lt.s32.totalorder %s595_s20, 3  ;;  %s3776_s19 = scalar_lea.vmem [#allocation5], %s2512_s7  ;;  %619 = vst [vmem:[#allocation2 + $0x10] sm:$0xff] (!%p2521_p7), %v3359_v0  ;;  %620 = vst [vmem:[#allocation2 + $0x18] sm:$0xff] (!%p2521_p7), %v3359_v0 }
  0x92   : > { %616 = sbr.rel (%p2521_p7) target bundleno = 153 (0x99), region = 86  ;;  %621 = vst [vmem:[#allocation2 + $0x20] sm:$0xff] (!%p2521_p7), %v3359_v0  ;;  %622 = vst [vmem:[#allocation2 + $0x28] sm:$0xff] (!%p2521_p7), %v3359_v0 }
  0x93   : > { %s4730_s20 = smov (!%p597_p6, %s595_s20), 3  ;;  %623 = vst [vmem:[#allocation2 + $0x30] sm:$0xff] (!%p2521_p7), %v3359_v0  ;;  %624 = vst [vmem:[#allocation2 + $0x38] sm:$0xff] (!%p2521_p7), %v3359_v0 }
  0x94   : > { %s2517_s25 = sshll.u32 %s4730_s20, 7  ;;  %625 = vst [vmem:[#allocation2 + $0x40] sm:$0xff] (!%p2521_p7), %v3359_v0  ;;  %626 = vst [vmem:[#allocation2 + $0x48] sm:$0xff] (!%p2521_p7), %v3359_v0 }
  0x95   : > { %s602_s27 = sadd.s32 %s2517_s25, %s4728_s8  ;;  %627 = vst [vmem:[#allocation2 + $0x50] sm:$0xff] (!%p2521_p7), %v3359_v0  ;;  %628 = vst [vmem:[#allocation2 + $0x58] sm:$0xff] (!%p2521_p7), %v3359_v0 }
  0x96   : > { %s2518_s13 = sshll.u32 %s602_s27, 3  ;;  %629 = vst [vmem:[#allocation2 + $0x60] sm:$0xff] (!%p2521_p7), %v3359_v0  ;;  %630 = vst [vmem:[#allocation2 + $0x68] sm:$0xff] (!%p2521_p7), %v3359_v0 }
  0x97   : > { %s3774_s2 = scalar_lea.vmem %s4582_s4, %s2518_s13  ;;  %631 = vst [vmem:[#allocation2 + $0x70] sm:$0xff] (!%p2521_p7), %v3359_v0  ;;  %632 = vst [vmem:[#allocation2 + $0x78] sm:$0xff] (!%p2521_p7), %v3359_v0 }
  0x99 PF: > { %v650_v1 = vld [vmem:[%s3776_s19 + $0x8] sm:$0xff]  ;;  %v652_v3 = vld [vmem:[%s3776_s19 + $0x18] sm:$0xff]  ;;  %v649_v6 = vld [vmem:[%s3776_s19] sm:$0xff]  ;;  %v3360_v8 = vmov 0.0   ;;  %p2586_p8 = scmp.ne.s32.totalorder %s3340_s26, 1 }
  0x9a   : > { %v654_v2 = vld [vmem:[%s3776_s19 + $0x28] sm:$0xff]  ;;  %v656_v5 = vld [vmem:[%s3776_s19 + $0x38] sm:$0xff]  ;;  %v653_v7 = vld [vmem:[%s3776_s19 + $0x20] sm:$0xff]  ;;  %905 = vmatprep.mubr.f32.mxu0 %v3360_v8  ;;  %1066 = vmatprep.mubr.f32.mxu1 %v3360_v8 }
  0x9b   : > { %v2749_v4 = vpack.c.bf16 %v654_v2, %v650_v1  ;;  %v2781_v9 = vpack.c.bf16 %v656_v5, %v652_v3  ;;  %v2751_v10 = vpack.c.bf16 %v653_v7, %v649_v6  ;;  %v651_v11 = vld [vmem:[%s3776_s19 + $0x10] sm:$0xff]  ;;  %v658_v13 = vld [vmem:[%s3776_s19 + $0x48] sm:$0xff]  ;;  %v660_v16 = vld [vmem:[%s3776_s19 + $0x58] sm:$0xff] }
  0x9c   : > { %v655_v12 = vld [vmem:[%s3776_s19 + $0x30] sm:$0xff]  ;;  %v662_v15 = vld [vmem:[%s3776_s19 + $0x68] sm:$0xff]  ;;  %v664_v17 = vld [vmem:[%s3776_s19 + $0x78] sm:$0xff] }
  0x9d   : > { %2750 = vmatprep.subr.bf16.mxu0 %v2749_v4  ;;  %v2783_v14 = vpack.c.bf16 %v655_v12, %v651_v11  ;;  %2782 = vmatprep.subr.bf16.mxu1 %v2781_v9  ;;  %v2753_v18 = vpack.c.bf16 %v662_v15, %v658_v13  ;;  %v2785_v19 = vpack.c.bf16 %v664_v17, %v660_v16  ;;  %v657_v20 = vld [vmem:[%s3776_s19 + $0x40] sm:$0xff]  ;;  %v659_v22 = vld [vmem:[%s3776_s19 + $0x50] sm:$0xff]  ;;  %v666_v25 = vld [vmem:[%s3776_s19 + $0x88] sm:$0xff] }
  0x9e   : > { %2752 = vmatpush1.bf16.msra.mxu0 %v2751_v10  ;;  %v661_v21 = vld [vmem:[%s3776_s19 + $0x60] sm:$0xff]  ;;  %v663_v24 = vld [vmem:[%s3776_s19 + $0x70] sm:$0xff]  ;;  %v670_v26 = vld [vmem:[%s3776_s19 + $0xa8] sm:$0xff] }
  0x9f   : > { %2784 = vmatpush1.bf16.msra.mxu1 %v2783_v14  ;;  %v2755_v23 = vpack.c.bf16 %v661_v21, %v657_v20  ;;  %2754 = vmatprep.subr.bf16.mxu0 %v2753_v18  ;;  %v2787_v27 = vpack.c.bf16 %v663_v24, %v659_v22  ;;  %v2757_v28 = vpack.c.bf16 %v670_v26, %v666_v25  ;;  %v668_v29 = vld [vmem:[%s3776_s19 + $0x98] sm:$0xff]  ;;  %v665_v31 = vld [vmem:[%s3776_s19 + $0x80] sm:$0xff]  ;;  %v667_v34 = vld [vmem:[%s3776_s19 + $0x90] sm:$0xff] }
  0xa0   : > { %2786 = vmatprep.subr.bf16.mxu1 %v2785_v19  ;;  %v672_v30 = vld [vmem:[%s3776_s19 + $0xb8] sm:$0xff]  ;;  %v669_v33 = vld [vmem:[%s3776_s19 + $0xa0] sm:$0xff]  ;;  %v671_v35 = vld [vmem:[%s3776_s19 + $0xb0] sm:$0xff] }
  0xa1   : > { %v2789_v32 = vpack.c.bf16 %v672_v30, %v668_v29  ;;  %v2759_v36 = vpack.c.bf16 %v669_v33, %v665_v31  ;;  %v674_v37 = vld [vmem:[%s3776_s19 + $0xc8] sm:$0xff]  ;;  %v676_v39 = vld [vmem:[%s3776_s19 + $0xd8] sm:$0xff]  ;;  %v2791_v40 = vpack.c.bf16 %v671_v35, %v667_v34  ;;  %v673_v43 = vld [vmem:[%s3776_s19 + $0xc0] sm:$0xff] }
  0xa2   : > { %2756 = vmatpush1.bf16.msra.mxu0 %v2755_v23  ;;  %v678_v38 = vld [vmem:[%s3776_s19 + $0xe8] sm:$0xff]  ;;  %v680_v42 = vld [vmem:[%s3776_s19 + $0xf8] sm:$0xff]  ;;  %v677_v44 = vld [vmem:[%s3776_s19 + $0xe0] sm:$0xff] }
  0xa3   : > { %2788 = vmatpush1.bf16.msra.mxu1 %v2787_v27  ;;  %2758 = vmatprep.subr.bf16.mxu0 %v2757_v28  ;;  %v2761_v41 = vpack.c.bf16 %v678_v38, %v674_v37  ;;  %v2793_v45 = vpack.c.bf16 %v680_v42, %v676_v39  ;;  %v675_v46 = vld [vmem:[%s3776_s19 + $0xd0] sm:$0xff]  ;;  %v682_v48 = vld [vmem:[%s3776_s19 + $0x108] sm:$0xff]  ;;  %v684_v50 = vld [vmem:[%s3776_s19 + $0x118] sm:$0xff]  ;;  %v2763_v52 = vpack.c.bf16 %v677_v44, %v673_v43 }
  0xa4   : > { %2790 = vmatprep.subr.bf16.mxu1 %v2789_v32  ;;  %v679_v47 = vld [vmem:[%s3776_s19 + $0xf0] sm:$0xff]  ;;  %v686_v49 = vld [vmem:[%s3776_s19 + $0x128] sm:$0xff]  ;;  %v688_v51 = vld [vmem:[%s3776_s19 + $0x138] sm:$0xff] }
  0xa5   : > { %v2795_v53 = vpack.c.bf16 %v679_v47, %v675_v46  ;;  %v2765_v54 = vpack.c.bf16 %v686_v49, %v682_v48  ;;  %v681_v55 = vld [vmem:[%s3776_s19 + $0x100] sm:$0xff]  ;;  %v683_v57 = vld [vmem:[%s3776_s19 + $0x110] sm:$0xff]  ;;  %v2797_v58 = vpack.c.bf16 %v688_v51, %v684_v50  ;;  %v690_v60 = vld [vmem:[%s3776_s19 + $0x148] sm:$0xff] }
  0xa6   : > { %2760 = vmatpush1.bf16.msra.mxu0 %v2759_v36  ;;  %v685_v56 = vld [vmem:[%s3776_s19 + $0x120] sm:$0xff]  ;;  %v687_v59 = vld [vmem:[%s3776_s19 + $0x130] sm:$0xff]  ;;  %v694_v61 = vld [vmem:[%s3776_s19 + $0x168] sm:$0xff] }
  0xa7   : > { %2792 = vmatpush1.bf16.msra.mxu1 %v2791_v40  ;;  %2762 = vmatprep.subr.bf16.mxu0 %v2761_v41  ;;  %v692_v62 = vld [vmem:[%s3776_s19 + $0x158] sm:$0xff]  ;;  %v2767_v0 = vpack.c.bf16 %v685_v56, %v681_v55  ;;  %v2799_v1 = vpack.c.bf16 %v687_v59, %v683_v57  ;;  %v2769_v2 = vpack.c.bf16 %v694_v61, %v690_v60  ;;  %v689_v3 = vld [vmem:[%s3776_s19 + $0x140] sm:$0xff]  ;;  %v691_v5 = vld [vmem:[%s3776_s19 + $0x150] sm:$0xff] }
  0xa8   : > { %2794 = vmatprep.subr.bf16.mxu1 %v2793_v45  ;;  %v696_v63 = vld [vmem:[%s3776_s19 + $0x178] sm:$0xff]  ;;  %v693_v4 = vld [vmem:[%s3776_s19 + $0x160] sm:$0xff]  ;;  %v695_v7 = vld [vmem:[%s3776_s19 + $0x170] sm:$0xff] }
  0xa9   : > { %v2801_v6 = vpack.c.bf16 %v696_v63, %v692_v62  ;;  %v698_v9 = vld [vmem:[%s3776_s19 + $0x188] sm:$0xff]  ;;  %v700_v11 = vld [vmem:[%s3776_s19 + $0x198] sm:$0xff]  ;;  %v2771_v13 = vpack.c.bf16 %v693_v4, %v689_v3  ;;  %v2803_v14 = vpack.c.bf16 %v695_v7, %v691_v5  ;;  %v697_v16 = vld [vmem:[%s3776_s19 + $0x180] sm:$0xff] }
  0xaa   : > { %2764 = vmatpush1.bf16.msra.mxu0 %v2763_v52  ;;  %v702_v10 = vld [vmem:[%s3776_s19 + $0x1a8] sm:$0xff]  ;;  %v704_v12 = vld [vmem:[%s3776_s19 + $0x1b8] sm:$0xff]  ;;  %v701_v17 = vld [vmem:[%s3776_s19 + $0x1a0] sm:$0xff] }
  0xab   : > { %2796 = vmatpush1.bf16.msra.mxu1 %v2795_v53  ;;  %2766 = vmatprep.subr.bf16.mxu0 %v2765_v54  ;;  %v2773_v15 = vpack.c.bf16 %v702_v10, %v698_v9  ;;  %v699_v18 = vld [vmem:[%s3776_s19 + $0x190] sm:$0xff]  ;;  %v2805_v19 = vpack.c.bf16 %v704_v12, %v700_v11  ;;  %v706_v21 = vld [vmem:[%s3776_s19 + $0x1c8] sm:$0xff]  ;;  %v708_v23 = vld [vmem:[%s3776_s19 + $0x1d8] sm:$0xff]  ;;  %v2775_v25 = vpack.c.bf16 %v701_v17, %v697_v16 }
  0xac   : > { %2798 = vmatprep.subr.bf16.mxu1 %v2797_v58  ;;  %v703_v20 = vld [vmem:[%s3776_s19 + $0x1b0] sm:$0xff]  ;;  %v710_v22 = vld [vmem:[%s3776_s19 + $0x1e8] sm:$0xff]  ;;  %v712_v24 = vld [vmem:[%s3776_s19 + $0x1f8] sm:$0xff] }
  0xad   : > { %v2807_v26 = vpack.c.bf16 %v703_v20, %v699_v18  ;;  %v2777_v27 = vpack.c.bf16 %v710_v22, %v706_v21  ;;  %v705_v28 = vld [vmem:[%s3776_s19 + $0x1c0] sm:$0xff]  ;;  %v707_v30 = vld [vmem:[%s3776_s19 + $0x1d0] sm:$0xff]  ;;  %v2809_v31 = vpack.c.bf16 %v712_v24, %v708_v23  ;;  %v714_v33 = vld [vmem:[%s3778_s11 + $0x8] sm:$0xff] }
  0xae   : > { %2768 = vmatpush1.bf16.msra.mxu0 %v2767_v0  ;;  %v709_v29 = vld [vmem:[%s3776_s19 + $0x1e0] sm:$0xff]  ;;  %v711_v32 = vld [vmem:[%s3776_s19 + $0x1f0] sm:$0xff]  ;;  %v718_v34 = vld [vmem:[%s3778_s11 + $0x28] sm:$0xff] }
  0xaf   : > { %2800 = vmatpush1.bf16.msra.mxu1 %v2799_v1  ;;  %2770 = vmatprep.subr.bf16.mxu0 %v2769_v2  ;;  %v716_v35 = vld [vmem:[%s3778_s11 + $0x18] sm:$0xff]  ;;  %v2779_v37 = vpack.c.bf16 %v709_v29, %v705_v28  ;;  %v2811_v38 = vpack.c.bf16 %v711_v32, %v707_v30  ;;  %v2813_v39 = vpack.c.bf16 %v718_v34, %v714_v33  ;;  %v713_v40 = vld [vmem:[%s3778_s11] sm:$0xff]  ;;  %v715_v43 = vld [vmem:[%s3778_s11 + $0x10] sm:$0xff] }
  0xb0   : > { %2802 = vmatprep.subr.bf16.mxu1 %v2801_v6  ;;  %v720_v36 = vld [vmem:[%s3778_s11 + $0x38] sm:$0xff]  ;;  %v717_v41 = vld [vmem:[%s3778_s11 + $0x20] sm:$0xff]  ;;  %v719_v44 = vld [vmem:[%s3778_s11 + $0x30] sm:$0xff] }
  0xb1   : > { %v2845_v42 = vpack.c.bf16 %v720_v36, %v716_v35  ;;  %v722_v45 = vld [vmem:[%s3778_s11 + $0x48] sm:$0xff]  ;;  %v3858_v47 = vld [vmem:[%s3764_s14] sm:$0xff]  ;;  %v2815_v48 = vpack.c.bf16 %v717_v41, %v713_v40  ;;  %v724_v49 = vld [vmem:[%s3778_s11 + $0x58] sm:$0xff]  ;;  %v2847_v51 = vpack.c.bf16 %v719_v44, %v715_v43 }
  0xb2   : > { %2772 = vmatpush1.bf16.msra.mxu0 %v2771_v13  ;;  %v726_v46 = vld [vmem:[%s3778_s11 + $0x68] sm:$0xff]  ;;  %v728_v50 = vld [vmem:[%s3778_s11 + $0x78] sm:$0xff]  ;;  %v721_v53 = vld [vmem:[%s3778_s11 + $0x40] sm:$0xff] }
  0xb3   : > { %2804 = vmatpush1.bf16.msra.mxu1 %v2803_v14  ;;  %2774 = vmatprep.subr.bf16.mxu0 %v2773_v15  ;;  %v2817_v52 = vpack.c.bf16 %v726_v46, %v722_v45  ;;  %v725_v54 = vld [vmem:[%s3778_s11 + $0x60] sm:$0xff]  ;;  %v723_v55 = vld [vmem:[%s3778_s11 + $0x50] sm:$0xff]  ;;  %v2849_v56 = vpack.c.bf16 %v728_v50, %v724_v49  ;;  %v730_v58 = vld [vmem:[%s3778_s11 + $0x88] sm:$0xff] }
  0xb4   : > { %2806 = vmatprep.subr.bf16.mxu1 %v2805_v19  ;;  %v727_v57 = vld [vmem:[%s3778_s11 + $0x70] sm:$0xff]  ;;  %v734_v59 = vld [vmem:[%s3778_s11 + $0xa8] sm:$0xff]  ;;  %v732_v61 = vld [vmem:[%s3778_s11 + $0x98] sm:$0xff]  ;;  %v2819_v63 = vpack.c.bf16 %v725_v54, %v721_v53 }
  0xb5   : > { %v3871_v60 = vld [vmem:[%s3764_s14 + $0x8] sm:$0xff]  ;;  %v736_v62 = vld [vmem:[%s3778_s11 + $0xb8] sm:$0xff]  ;;  %v2851_v0 = vpack.c.bf16 %v727_v57, %v723_v55  ;;  %v2821_v1 = vpack.c.bf16 %v734_v59, %v730_v58  ;;  %v729_v2 = vld [vmem:[%s3778_s11 + $0x80] sm:$0xff] }
  0xb6   : > { %2776 = vmatpush1.bf16.msra.mxu0 %v2775_v25  ;;  %v733_v3 = vld [vmem:[%s3778_s11 + $0xa0] sm:$0xff]  ;;  %v731_v4 = vld [vmem:[%s3778_s11 + $0x90] sm:$0xff]  ;;  %v2853_v5 = vpack.c.bf16 %v736_v62, %v732_v61  ;;  %v738_v7 = vld [vmem:[%s3778_s11 + $0xc8] sm:$0xff] }
  0xb7   : > { %2808 = vmatpush1.bf16.msra.mxu1 %v2807_v26  ;;  %2778 = vmatprep.subr.bf16.mxu0 %v2777_v27  ;;  %v735_v6 = vld [vmem:[%s3778_s11 + $0xb0] sm:$0xff]  ;;  %v742_v9 = vld [vmem:[%s3778_s11 + $0xe8] sm:$0xff]  ;;  %v740_v11 = vld [vmem:[%s3778_s11 + $0xd8] sm:$0xff]  ;;  %v2823_v13 = vpack.c.bf16 %v733_v3, %v729_v2 }
  0xb8   : > { %2810 = vmatprep.subr.bf16.mxu1 %v2809_v31  ;;  %v3887_v10 = vld [vmem:[%s3764_s14 + $0x10] sm:$0xff]  ;;  %v744_v12 = vld [vmem:[%s3778_s11 + $0xf8] sm:$0xff]  ;;  %v2855_v14 = vpack.c.bf16 %v735_v6, %v731_v4  ;;  %v2825_v15 = vpack.c.bf16 %v742_v9, %v738_v7  ;;  %v737_v16 = vld [vmem:[%s3778_s11 + $0xc0] sm:$0xff] }
  0xb9   : > { %v741_v17 = vld [vmem:[%s3778_s11 + $0xe0] sm:$0xff]  ;;  %v739_v18 = vld [vmem:[%s3778_s11 + $0xd0] sm:$0xff]  ;;  %v2857_v19 = vpack.c.bf16 %v744_v12, %v740_v11  ;;  %v746_v21 = vld [vmem:[%s3778_s11 + $0x108] sm:$0xff] }
  0xba   : > { %2780 = vmatpush1.bf16.msra.mxu0 %v2779_v37  ;;  %v743_v20 = vld [vmem:[%s3778_s11 + $0xf0] sm:$0xff]  ;;  %v750_v22 = vld [vmem:[%s3778_s11 + $0x128] sm:$0xff]  ;;  %v3902_v23 = vld [vmem:[%s3764_s14 + $0x18] sm:$0xff]  ;;  %v2827_v26 = vpack.c.bf16 %v741_v17, %v737_v16 }
  0xbb   : > { %2812 = vmatpush1.bf16.msra.mxu1 %v2811_v38  ;;  %2814 = vmatprep.subr.bf16.mxu0 %v2813_v39  ;;  %v748_v24 = vld [vmem:[%s3778_s11 + $0x118] sm:$0xff]  ;;  %v2859_v27 = vpack.c.bf16 %v743_v20, %v739_v18  ;;  %v2829_v28 = vpack.c.bf16 %v750_v22, %v746_v21  ;;  %v745_v29 = vld [vmem:[%s3778_s11 + $0x100] sm:$0xff]  ;;  %v747_v31 = vld [vmem:[%s3778_s11 + $0x110] sm:$0xff] }
  0xbc   : > { %2846 = vmatprep.subr.bf16.mxu1 %v2845_v42  ;;  %v752_v25 = vld [vmem:[%s3778_s11 + $0x138] sm:$0xff]  ;;  %v749_v30 = vld [vmem:[%s3778_s11 + $0x120] sm:$0xff]  ;;  %v751_v33 = vld [vmem:[%s3778_s11 + $0x130] sm:$0xff] }
  0xbd   : > { %906 = vmatmul.mubr.f32.vlgmr.msra.gmra.mrb[0].mxu0 %v3858_v47  ;;  %v2861_v32 = vpack.c.bf16 %v752_v25, %v748_v24  ;;  %v754_v34 = vld [vmem:[%s3778_s11 + $0x148] sm:$0xff]  ;;  %v3917_v36 = vld [vmem:[%s3764_s14 + $0x20] sm:$0xff]  ;;  %v756_v37 = vld [vmem:[%s3778_s11 + $0x158] sm:$0xff]  ;;  %v2831_v39 = vpack.c.bf16 %v749_v30, %v745_v29  ;;  %v2863_v40 = vpack.c.bf16 %v751_v33, %v747_v31 }
  0xbe   : > { %1067 = vmatmul.mubr.f32.vlgmr.msra.gmra.mrb[0].mxu1 %v3858_v47  ;;  %2816 = vmatpush1.bf16.msra.mxu0 %v2815_v48  ;;  %v758_v35 = vld [vmem:[%s3778_s11 + $0x168] sm:$0xff]  ;;  %v760_v38 = vld [vmem:[%s3778_s11 + $0x178] sm:$0xff]  ;;  %v753_v42 = vld [vmem:[%s3778_s11 + $0x140] sm:$0xff] }
  0xbf   : > { %2848 = vmatpush1.bf16.msra.mxu1 %v2847_v51  ;;  %911 = vmatprep.mubr.f32.mxu0 %v3360_v8  ;;  %v2833_v41 = vpack.c.bf16 %v758_v35, %v754_v34  ;;  %v757_v43 = vld [vmem:[%s3778_s11 + $0x160] sm:$0xff]  ;;  %v755_v44 = vld [vmem:[%s3778_s11 + $0x150] sm:$0xff]  ;;  %v2865_v45 = vpack.c.bf16 %v760_v38, %v756_v37  ;;  %v762_v48 = vld [vmem:[%s3778_s11 + $0x188] sm:$0xff] }
  0xc0   : > { %1072 = vmatprep.mubr.f32.mxu1 %v3360_v8  ;;  %2818 = vmatprep.subr.bf16.mxu0 %v2817_v52  ;;  %v759_v46 = vld [vmem:[%s3778_s11 + $0x170] sm:$0xff]  ;;  %v766_v49 = vld [vmem:[%s3778_s11 + $0x1a8] sm:$0xff]  ;;  %v764_v51 = vld [vmem:[%s3778_s11 + $0x198] sm:$0xff]  ;;  %v2835_v53 = vpack.c.bf16 %v757_v43, %v753_v42 }
  0xc1   : > { %912 = vmatmul.mubr.f32.gmra.mrb[2].mxu0 %v3871_v60  ;;  %2850 = vmatprep.subr.bf16.mxu1 %v2849_v56  ;;  %v3932_v50 = vld [vmem:[%s3764_s14 + $0x28] sm:$0xff]  ;;  %v768_v52 = vld [vmem:[%s3778_s11 + $0x1b8] sm:$0xff]  ;;  %v2867_v54 = vpack.c.bf16 %v759_v46, %v755_v44  ;;  %v2837_v55 = vpack.c.bf16 %v766_v49, %v762_v48  ;;  %v761_v56 = vld [vmem:[%s3778_s11 + $0x180] sm:$0xff] }
  0xc2   : > { %1073 = vmatmul.mubr.f32.gmra.mrb[2].mxu1 %v3871_v60  ;;  %917 = vmatprep.mubr.f32.mxu0 %v3360_v8  ;;  %v765_v57 = vld [vmem:[%s3778_s11 + $0x1a0] sm:$0xff]  ;;  %v763_v58 = vld [vmem:[%s3778_s11 + $0x190] sm:$0xff]  ;;  %v2869_v59 = vpack.c.bf16 %v768_v52, %v764_v51  ;;  %v770_v62 = vld [vmem:[%s3778_s11 + $0x1c8] sm:$0xff] }
  0xc3   : > { %1078 = vmatprep.mubr.f32.mxu1 %v3360_v8  ;;  %2820 = vmatpush1.bf16.msra.mxu0 %v2819_v63  ;;  %v767_v61 = vld [vmem:[%s3778_s11 + $0x1b0] sm:$0xff]  ;;  %v774_v63 = vld [vmem:[%s3778_s11 + $0x1e8] sm:$0xff]  ;;  %v776_v2 = vld [vmem:[%s3778_s11 + $0x1f8] sm:$0xff]  ;;  %v2839_v3 = vpack.c.bf16 %v765_v57, %v761_v56 }
  0xc4   : > { %2852 = vmatpush1.bf16.msra.mxu1 %v2851_v0  ;;  %2822 = vmatprep.subr.bf16.mxu0 %v2821_v1  ;;  %v3947_v0 = vld [vmem:[%s3764_s14 + $0x30] sm:$0xff]  ;;  %v772_v1 = vld [vmem:[%s3778_s11 + $0x1d8] sm:$0xff]  ;;  %v2871_v4 = vpack.c.bf16 %v767_v61, %v763_v58  ;;  %v769_v6 = vld [vmem:[%s3778_s11 + $0x1c0] sm:$0xff] }
  0xc5   : > { %918 = vmatmul.mubr.f32.gmra.mrb[4].mxu0 %v3887_v10  ;;  %2854 = vmatprep.subr.bf16.mxu1 %v2853_v5  ;;  %v2841_v5 = vpack.c.bf16 %v774_v63, %v770_v62  ;;  %v773_v7 = vld [vmem:[%s3778_s11 + $0x1e0] sm:$0xff]  ;;  %v2873_v9 = vpack.c.bf16 %v776_v2, %v772_v1  ;;  %v771_v11 = vld [vmem:[%s3778_s11 + $0x1d0] sm:$0xff]  ;;  %v3974_v17 = vld [vmem:[%s3764_s14 + $0x48] sm:$0xff] }
  0xc6   : > { %1079 = vmatmul.mubr.f32.gmra.mrb[4].mxu1 %v3887_v10  ;;  %923 = vmatprep.mubr.f32.mxu0 %v3360_v8  ;;  %v775_v12 = vld [vmem:[%s3778_s11 + $0x1f0] sm:$0xff]  ;;  %v3967_v16 = vld [vmem:[%s3764_s14 + $0x40] sm:$0xff]  ;;  %v4002_v21 = vld [vmem:[%s3764_s14 + $0x68] sm:$0xff] }
  0xc7   : > { %1084 = vmatprep.mubr.f32.mxu1 %v3360_v8  ;;  %2824 = vmatpush1.bf16.msra.mxu0 %v2823_v13  ;;  %v3960_v13 = vld [vmem:[%s3764_s14 + $0x38] sm:$0xff]  ;;  %v3981_v18 = vld [vmem:[%s3764_s14 + $0x50] sm:$0xff]  ;;  %v3995_v20 = vld [vmem:[%s3764_s14 + $0x60] sm:$0xff] }
  0xc8   : > { %2856 = vmatpush1.bf16.msra.mxu1 %v2855_v14  ;;  %2826 = vmatprep.subr.bf16.mxu0 %v2825_v15  ;;  %v2843_v14 = vpack.c.bf16 %v773_v7, %v769_v6  ;;  %v2875_v15 = vpack.c.bf16 %v775_v12, %v771_v11  ;;  %v4009_v22 = vld [vmem:[%s3764_s14 + $0x70] sm:$0xff]  ;;  %v4016_v24 = vld [vmem:[%s3764_s14 + $0x78] sm:$0xff]  ;;  %v826_v25 = vld [vmem:[%s3774_s2 + $0x188] sm:$0xff] }
  0xc9   : > { %924 = vmatmul.mubr.f32.gmra.mrb[6].mxu0 %v3902_v23  ;;  %2858 = vmatprep.subr.bf16.mxu1 %v2857_v19  ;;  %v3988_v19 = vld [vmem:[%s3764_s14 + $0x58] sm:$0xff]  ;;  %v809_v30 = vld [vmem:[%s3774_s2 + $0x100] sm:$0xff]  ;;  %v810_v31 = vld [vmem:[%s3774_s2 + $0x108] sm:$0xff] }
  0xca   : > { %1085 = vmatmul.mubr.f32.gmra.mrb[6].mxu1 %v3902_v23  ;;  %929 = vmatprep.mubr.f32.mxu0 %v3360_v8  ;;  %v795_v33 = vld [vmem:[%s3774_s2 + $0x90] sm:$0xff]  ;;  %v796_v34 = vld [vmem:[%s3774_s2 + $0x98] sm:$0xff]  ;;  %v797_v44 = vld [vmem:[%s3774_s2 + $0xa0] sm:$0xff] }
  0xcb   : > { %1090 = vmatprep.mubr.f32.mxu1 %v3360_v8  ;;  %2828 = vmatpush1.bf16.msra.mxu0 %v2827_v26  ;;  %v777_v26 = vld [vmem:[%s3774_s2] sm:$0xff]  ;;  %v827_v35 = vld [vmem:[%s3774_s2 + $0x190] sm:$0xff]  ;;  %v828_v37 = vld [vmem:[%s3774_s2 + $0x198] sm:$0xff] }
  0xcc   : > { %2860 = vmatpush1.bf16.msra.mxu1 %v2859_v27  ;;  %2830 = vmatprep.subr.bf16.mxu0 %v2829_v28  ;;  %v778_v27 = vld [vmem:[%s3774_s2 + $0x8] sm:$0xff]  ;;  %v779_v38 = vld [vmem:[%s3774_s2 + $0x10] sm:$0xff]  ;;  %v812_v42 = vld [vmem:[%s3774_s2 + $0x118] sm:$0xff] }
  0xcd   : > { %930 = vmatmul.mubr.f32.gmra.mrb[8].mxu0 %v3917_v36  ;;  %2862 = vmatprep.subr.bf16.mxu1 %v2861_v32  ;;  %v2879_v29 = vpack.c.bf16 %v778_v27, %v777_v26  ;;  %v2911_v32 = vpack.c.bf16 %v810_v31, %v809_v30  ;;  %v829_v46 = vld [vmem:[%s3774_s2 + $0x1a0] sm:$0xff]  ;;  %v830_v49 = vld [vmem:[%s3774_s2 + $0x1a8] sm:$0xff]  ;;  %v799_v57 = vld [vmem:[%s3774_s2 + $0xb0] sm:$0xff] }
  0xce   : > { %1091 = vmatmul.mubr.f32.gmra.mrb[8].mxu1 %v3917_v36  ;;  %935 = vmatprep.mubr.f32.mxu0 %v3360_v8  ;;  %v782_v51 = vld [vmem:[%s3774_s2 + $0x28] sm:$0xff]  ;;  %v2917_v52 = vpack.c.bf16 %v830_v49, %v829_v46  ;;  %v800_v58 = vld [vmem:[%s3774_s2 + $0xb8] sm:$0xff]  ;;  %v783_v63 = vld [vmem:[%s3774_s2 + $0x30] sm:$0xff] }
  0xcf   : > { %1096 = vmatprep.mubr.f32.mxu1 %v3360_v8  ;;  %2832 = vmatpush1.bf16.msra.mxu0 %v2831_v39  ;;  %v2913_v39 = vpack.c.bf16 %v828_v37, %v827_v35  ;;  %v2889_v61 = vpack.c.bf16 %v800_v58, %v799_v57  ;;  %v832_v62 = vld [vmem:[%s3774_s2 + $0x1b8] sm:$0xff]  ;;  %v801_v6 = vld [vmem:[%s3774_s2 + $0xc0] sm:$0xff]  ;;  %v802_v7 = vld [vmem:[%s3774_s2 + $0xc8] sm:$0xff] }
  0xd0   : > { %2864 = vmatpush1.bf16.msra.mxu1 %v2863_v40  ;;  %2834 = vmatprep.subr.bf16.mxu0 %v2833_v41  ;;  %v811_v41 = vld [vmem:[%s3774_s2 + $0x110] sm:$0xff]  ;;  %v2893_v11 = vpack.c.bf16 %v802_v7, %v801_v6  ;;  %v834_v12 = vld [vmem:[%s3774_s2 + $0x1c8] sm:$0xff]  ;;  %v820_v27 = vld [vmem:[%s3774_s2 + $0x158] sm:$0xff] }
  0xd1   : > { %936 = vmatmul.mubr.f32.gmra.mrb[10].mxu0 %v3932_v50  ;;  %2866 = vmatprep.subr.bf16.mxu1 %v2865_v45  ;;  %v2915_v43 = vpack.c.bf16 %v812_v42, %v811_v41  ;;  %v798_v45 = vld [vmem:[%s3774_s2 + $0xa8] sm:$0xff]  ;;  %v819_v26 = vld [vmem:[%s3774_s2 + $0x150] sm:$0xff]  ;;  %v837_v31 = vld [vmem:[%s3774_s2 + $0x1e0] sm:$0xff] }
  0xd2   : > { %1097 = vmatmul.mubr.f32.gmra.mrb[10].mxu1 %v3932_v50  ;;  %941 = vmatprep.mubr.f32.mxu0 %v3360_v8  ;;  %v2885_v48 = vpack.c.bf16 %v798_v45, %v797_v44  ;;  %v806_v30 = vld [vmem:[%s3774_s2 + $0xe8] sm:$0xff]  ;;  %v808_v41 = vld [vmem:[%s3774_s2 + $0xf8] sm:$0xff]  ;;  %v839_v42 = vld [vmem:[%s3774_s2 + $0x1f0] sm:$0xff] }
  0xd3   : > { %1102 = vmatprep.mubr.f32.mxu1 %v3360_v8  ;;  %2836 = vmatpush1.bf16.msra.mxu0 %v2835_v53  ;;  %v790_v35 = vld [vmem:[%s3774_s2 + $0x68] sm:$0xff]  ;;  %v840_v44 = vld [vmem:[%s3774_s2 + $0x1f8] sm:$0xff]  ;;  %v791_v45 = vld [vmem:[%s3774_s2 + $0x70] sm:$0xff] }
  0xd4   : > { %2868 = vmatpush1.bf16.msra.mxu1 %v2867_v54  ;;  %2838 = vmatprep.subr.bf16.mxu0 %v2837_v55  ;;  %v813_v54 = vld [vmem:[%s3774_s2 + $0x120] sm:$0xff]  ;;  %v814_v55 = vld [vmem:[%s3774_s2 + $0x128] sm:$0xff]  ;;  %v792_v46 = vld [vmem:[%s3774_s2 + $0x78] sm:$0xff] }
  0xd5   : > { %942 = vmatmul.mubr.f32.gmra.mrb[12].mxu0 %v3947_v0  ;;  %2870 = vmatprep.subr.bf16.mxu1 %v2869_v59  ;;  %v2919_v56 = vpack.c.bf16 %v814_v55, %v813_v54  ;;  %v831_v59 = vld [vmem:[%s3774_s2 + $0x1b0] sm:$0xff]  ;;  %v2907_v49 = vpack.c.bf16 %v792_v46, %v791_v45 }
  0xd6   : > { %1103 = vmatmul.mubr.f32.gmra.mrb[12].mxu1 %v3947_v0  ;;  %947 = vmatprep.mubr.f32.mxu0 %v3360_v8  ;;  %v2921_v1 = vpack.c.bf16 %v832_v62, %v831_v59 }
  0xd7   : > { %1108 = vmatprep.mubr.f32.mxu1 %v3360_v8  ;;  %2840 = vmatpush1.bf16.msra.mxu0 %v2839_v3  ;;  %v815_v3 = vld [vmem:[%s3774_s2 + $0x130] sm:$0xff] }
  0xd8   : > { %2872 = vmatpush1.bf16.msra.mxu1 %v2871_v4  ;;  %2842 = vmatprep.subr.bf16.mxu0 %v2841_v5  ;;  %v816_v4 = vld [vmem:[%s3774_s2 + $0x138] sm:$0xff] }
  0xd9   : > { %948 = vmatmul.mubr.f32.gmra.mrb[14].mxu0 %v3960_v13  ;;  %2874 = vmatprep.subr.bf16.mxu1 %v2873_v9  ;;  %v2923_v5 = vpack.c.bf16 %v816_v4, %v815_v3  ;;  %v833_v9 = vld [vmem:[%s3774_s2 + $0x1c0] sm:$0xff] }
  0xda   : > { %1109 = vmatmul.mubr.f32.gmra.mrb[14].mxu1 %v3960_v13  ;;  %953 = vmatprep.mubr.f32.mxu0 %v3360_v8 }
  0xdb   : > { %1114 = vmatprep.mubr.f32.mxu1 %v3360_v8  ;;  %2844 = vmatpush1.bf16.msra.mxu0 %v2843_v14  ;;  %v786_v14 = vld [vmem:[%s3774_s2 + $0x48] sm:$0xff] }
  0xdc   : > { %2876 = vmatpush1.bf16.msra.mxu1 %v2875_v15  ;;  %v2925_v15 = vpack.c.bf16 %v834_v12, %v833_v9 }
  0xdd   : > { %954 = vmatmul.mubr.f32.gmra.mrb[16].mxu0 %v3967_v16 }
  0xde   : > { %1115 = vmatmul.mubr.f32.gmra.mrb[16].mxu1 %v3967_v16  ;;  %959 = vmatprep.mubr.f32.mxu0 %v3360_v8 }
  0xdf   : > { %1120 = vmatprep.mubr.f32.mxu1 %v3360_v8 }
  0xe1   : > { %960 = vmatmul.mubr.f32.gmra.mrb[18].mxu0 %v3974_v17 }
  0xe2   : > { %1121 = vmatmul.mubr.f32.gmra.mrb[18].mxu1 %v3974_v17  ;;  %965 = vmatprep.mubr.f32.mxu0 %v3360_v8 }
  0xe3   : > { %1126 = vmatprep.mubr.f32.mxu1 %v3360_v8 }
  0xe5   : > { %966 = vmatmul.mubr.f32.gmra.mrb[20].mxu0 %v3981_v18 }
  0xe6   : > { %1127 = vmatmul.mubr.f32.gmra.mrb[20].mxu1 %v3981_v18  ;;  %971 = vmatprep.mubr.f32.mxu0 %v3360_v8 }
  0xe7   : > { %1132 = vmatprep.mubr.f32.mxu1 %v3360_v8 }
  0xe9   : > { %972 = vmatmul.mubr.f32.gmra.mrb[22].mxu0 %v3988_v19 }
  0xea   : > { %1133 = vmatmul.mubr.f32.gmra.mrb[22].mxu1 %v3988_v19  ;;  %977 = vmatprep.mubr.f32.mxu0 %v3360_v8 }
  0xeb   : > { %1138 = vmatprep.mubr.f32.mxu1 %v3360_v8 }
  0xed   : > { %978 = vmatmul.mubr.f32.gmra.mrb[24].mxu0 %v3995_v20 }
  0xee   : > { %1139 = vmatmul.mubr.f32.gmra.mrb[24].mxu1 %v3995_v20  ;;  %983 = vmatprep.mubr.f32.mxu0 %v3360_v8 }
  0xef   : > { %1144 = vmatprep.mubr.f32.mxu1 %v3360_v8 }
  0xf1   : > { %984 = vmatmul.mubr.f32.gmra.mrb[26].mxu0 %v4002_v21 }
  0xf2   : > { %1145 = vmatmul.mubr.f32.gmra.mrb[26].mxu1 %v4002_v21  ;;  %989 = vmatprep.mubr.f32.mxu0 %v3360_v8 }
  0xf3   : > { %1150 = vmatprep.mubr.f32.mxu1 %v3360_v8 }
  0xf5   : > { %990 = vmatmul.mubr.f32.gmra.mrb[28].mxu0 %v4009_v22 }
  0xf6   : > { %1151 = vmatmul.mubr.f32.gmra.mrb[28].mxu1 %v4009_v22  ;;  %995 = vmatprep.mubr.f32.mxu0 %v3360_v8 }
  0xf7   : > { %1156 = vmatprep.mubr.f32.mxu1 %v3360_v8 }
  0xf9   : > { %996 = vmatmul.mubr.f32.gmra.mrb[30].mxu0 %v4016_v24 }
  0xfa   : > { %1157 = vmatmul.mubr.f32.gmra.mrb[30].mxu1 %v4016_v24  ;;  %1227 = vmatprep.mubr.f32.mxu0 %v3360_v8 }
  0xfb   : > { %1388 = vmatprep.mubr.f32.mxu1 %v3360_v8 }
  0xfd   : > { %1228 = vmatmul.mubr.f32.vlgmr.msra.gmra.mrb[32].mxu0 %v3858_v47 }
  0xfe   : > { %1389 = vmatmul.mubr.f32.vlgmr.msra.gmra.mrb[32].mxu1 %v3858_v47  ;;  %1233 = vmatprep.mubr.f32.mxu0 %v3360_v8  ;;  %v793_v47 = vld [vmem:[%s3774_s2 + $0x80] sm:$0xff] }
  0xff   : > { %1394 = vmatprep.mubr.f32.mxu1 %v3360_v8 }
 0x101   : > { %1234 = vmatmul.mubr.f32.gmra.mrb[34].mxu0 %v3871_v60 }
 0x102   : > { %1395 = vmatmul.mubr.f32.gmra.mrb[34].mxu1 %v3871_v60  ;;  %1239 = vmatprep.mubr.f32.mxu0 %v3360_v8  ;;  %v794_v60 = vld [vmem:[%s3774_s2 + $0x88] sm:$0xff] }
 0x103   : > { %1400 = vmatprep.mubr.f32.mxu1 %v3360_v8 }
 0x105   : > { %1240 = vmatmul.mubr.f32.gmra.mrb[36].mxu0 %v3887_v10 }
 0x106   : > { %1401 = vmatmul.mubr.f32.gmra.mrb[36].mxu1 %v3887_v10  ;;  %1245 = vmatprep.mubr.f32.mxu0 %v3360_v8  ;;  %v825_v10 = vld [vmem:[%s3774_s2 + $0x180] sm:$0xff] }
 0x107   : > { %1406 = vmatprep.mubr.f32.mxu1 %v3360_v8  ;;  %v2909_v28 = vpack.c.bf16 %v826_v25, %v825_v10  ;;  %v788_v10 = vld [vmem:[%s3774_s2 + $0x58] sm:$0xff] }
 0x109   : > { %1246 = vmatmul.mubr.f32.gmra.mrb[38].mxu0 %v3902_v23  ;;  %2910 = vmatprep.subr.bf16.mxu1 %v2909_v28  ;;  %v2931_v28 = vpack.c.bf16 %v820_v27, %v819_v26 }
 0x10a   : > { %1407 = vmatmul.mubr.f32.gmra.mrb[38].mxu1 %v3902_v23  ;;  %1251 = vmatprep.mubr.f32.mxu0 %v3360_v8  ;;  %v2877_v23 = vpack.c.bf16 %v794_v60, %v793_v47  ;;  %v836_v47 = vld [vmem:[%s3774_s2 + $0x1d8] sm:$0xff]  ;;  %v787_v60 = vld [vmem:[%s3774_s2 + $0x50] sm:$0xff] }
 0x10b   : > { %1412 = vmatprep.mubr.f32.mxu1 %v3360_v8  ;;  %2912 = vmatpush3.bf16.msra.mxu1 %v2911_v32  ;;  %v2899_v25 = vpack.c.bf16 %v788_v10, %v787_v60 }
 0x10c   : > { %2878 = vmatprep.subr.bf16.mxu0 %v2877_v23  ;;  %2914 = vmatprep.subr.bf16.mxu1 %v2913_v39 }
 0x10d   : > { %1252 = vmatmul.mubr.f32.gmra.mrb[40].mxu0 %v3917_v36 }
 0x10e   : > { %1413 = vmatmul.mubr.f32.gmra.mrb[40].mxu1 %v3917_v36  ;;  %1257 = vmatprep.mubr.f32.mxu0 %v3360_v8  ;;  %v2881_v36 = vpack.c.bf16 %v796_v34, %v795_v33  ;;  %v838_v33 = vld [vmem:[%s3774_s2 + $0x1e8] sm:$0xff]  ;;  %v789_v34 = vld [vmem:[%s3774_s2 + $0x60] sm:$0xff] }
 0x10f   : > { %1418 = vmatprep.mubr.f32.mxu1 %v3360_v8  ;;  %2880 = vmatpush3.bf16.msra.mxu0 %v2879_v29  ;;  %v805_v29 = vld [vmem:[%s3774_s2 + $0xe0] sm:$0xff]  ;;  %v2903_v37 = vpack.c.bf16 %v790_v35, %v789_v34 }
 0x110   : > { %2882 = vmatprep.subr.bf16.mxu0 %v2881_v36  ;;  %2916 = vmatpush3.bf16.msra.mxu1 %v2915_v43  ;;  %v2901_v32 = vpack.c.bf16 %v806_v30, %v805_v29  ;;  %v2933_v36 = vpack.c.bf16 %v838_v33, %v837_v31 }
 0x111   : > { %1258 = vmatmul.mubr.f32.gmra.mrb[42].mxu0 %v3932_v50  ;;  %2918 = vmatprep.subr.bf16.mxu1 %v2917_v52 }
 0x112   : > { %1419 = vmatmul.mubr.f32.gmra.mrb[42].mxu1 %v3932_v50  ;;  %1263 = vmatprep.mubr.f32.mxu0 %v3360_v8  ;;  %v781_v50 = vld [vmem:[%s3774_s2 + $0x20] sm:$0xff] }
 0x113   : > { %1424 = vmatprep.mubr.f32.mxu1 %v3360_v8  ;;  %v2887_v53 = vpack.c.bf16 %v782_v51, %v781_v50  ;;  %v823_v50 = vld [vmem:[%s3774_s2 + $0x170] sm:$0xff]  ;;  %v824_v51 = vld [vmem:[%s3774_s2 + $0x178] sm:$0xff] }
 0x114   : > { %2920 = vmatpush3.bf16.msra.mxu1 %v2919_v56  ;;  %v2939_v52 = vpack.c.bf16 %v824_v51, %v823_v50 }
 0x115   : > { %1264 = vmatmul.mubr.f32.gmra.mrb[44].mxu0 %v3947_v0  ;;  %2922 = vmatprep.subr.bf16.mxu1 %v2921_v1 }
 0x116   : > { %1425 = vmatmul.mubr.f32.gmra.mrb[44].mxu1 %v3947_v0  ;;  %1269 = vmatprep.mubr.f32.mxu0 %v3360_v8  ;;  %v784_v0 = vld [vmem:[%s3774_s2 + $0x38] sm:$0xff] }
 0x117   : > { %1430 = vmatprep.mubr.f32.mxu1 %v3360_v8  ;;  %v2891_v2 = vpack.c.bf16 %v784_v0, %v783_v63 }
 0x118   : > { %2924 = vmatpush3.bf16.msra.mxu1 %v2923_v5 }
 0x119   : > { %1270 = vmatmul.mubr.f32.gmra.mrb[46].mxu0 %v3960_v13  ;;  %2926 = vmatprep.subr.bf16.mxu1 %v2925_v15 }
 0x11a   : > { %1431 = vmatmul.mubr.f32.gmra.mrb[46].mxu1 %v3960_v13  ;;  %1275 = vmatprep.mubr.f32.mxu0 %v3360_v8  ;;  %v785_v13 = vld [vmem:[%s3774_s2 + $0x40] sm:$0xff] }
 0x11b   : > { %1436 = vmatprep.mubr.f32.mxu1 %v3360_v8 }
 0x11d   : > { %1276 = vmatmul.mubr.f32.gmra.mrb[48].mxu0 %v3967_v16 }
 0x11e   : > { %1437 = vmatmul.mubr.f32.gmra.mrb[48].mxu1 %v3967_v16  ;;  %1281 = vmatprep.mubr.f32.mxu0 %v3360_v8  ;;  %v2895_v16 = vpack.c.bf16 %v786_v14, %v785_v13 }
 0x11f   : > { %1442 = vmatprep.mubr.f32.mxu1 %v3360_v8 }
 0x121   : > { %1282 = vmatmul.mubr.f32.gmra.mrb[50].mxu0 %v3974_v17 }
 0x122   : > { %1443 = vmatmul.mubr.f32.gmra.mrb[50].mxu1 %v3974_v17  ;;  %1287 = vmatprep.mubr.f32.mxu0 %v3360_v8  ;;  %v817_v17 = vld [vmem:[%s3774_s2 + $0x140] sm:$0xff] }
 0x123   : > { %1448 = vmatprep.mubr.f32.mxu1 %v3360_v8 }
 0x125   : > { %1288 = vmatmul.mubr.f32.gmra.mrb[52].mxu0 %v3981_v18 }
 0x126   : > { %1449 = vmatmul.mubr.f32.gmra.mrb[52].mxu1 %v3981_v18  ;;  %1293 = vmatprep.mubr.f32.mxu0 %v3360_v8  ;;  %v818_v18 = vld [vmem:[%s3774_s2 + $0x148] sm:$0xff] }
 0x127   : > { %1454 = vmatprep.mubr.f32.mxu1 %v3360_v8 }
 0x129   : > { %1294 = vmatmul.mubr.f32.gmra.mrb[54].mxu0 %v3988_v19 }
 0x12a   : > { %1455 = vmatmul.mubr.f32.gmra.mrb[54].mxu1 %v3988_v19  ;;  %1299 = vmatprep.mubr.f32.mxu0 %v3360_v8  ;;  %v2927_v19 = vpack.c.bf16 %v818_v18, %v817_v17 }
 0x12b   : > { %1460 = vmatprep.mubr.f32.mxu1 %v3360_v8 }
 0x12c   : > { %2928 = vmatpush3.bf16.msra.mxu1 %v2927_v19 }
 0x12d   : > { %1300 = vmatmul.mubr.f32.gmra.mrb[56].mxu0 %v3995_v20 }
 0x12e   : > { %1461 = vmatmul.mubr.f32.gmra.mrb[56].mxu1 %v3995_v20  ;;  %1305 = vmatprep.mubr.f32.mxu0 %v3360_v8  ;;  %v803_v20 = vld [vmem:[%s3774_s2 + $0xd0] sm:$0xff] }
 0x12f   : > { %1466 = vmatprep.mubr.f32.mxu1 %v3360_v8 }
 0x131   : > { %1306 = vmatmul.mubr.f32.gmra.mrb[58].mxu0 %v4002_v21 }
 0x132   : > { %1467 = vmatmul.mubr.f32.gmra.mrb[58].mxu1 %v4002_v21  ;;  %1311 = vmatprep.mubr.f32.mxu0 %v3360_v8  ;;  %v804_v21 = vld [vmem:[%s3774_s2 + $0xd8] sm:$0xff] }
 0x133   : > { %1472 = vmatprep.mubr.f32.mxu1 %v3360_v8 }
 0x135   : > { %1312 = vmatmul.mubr.f32.gmra.mrb[60].mxu0 %v4009_v22 }
 0x136   : > { %1473 = vmatmul.mubr.f32.gmra.mrb[60].mxu1 %v4009_v22  ;;  %1317 = vmatprep.mubr.f32.mxu0 %v3360_v8  ;;  %v835_v22 = vld [vmem:[%s3774_s2 + $0x1d0] sm:$0xff] }
 0x137   : > { %1478 = vmatprep.mubr.f32.mxu1 %v3360_v8  ;;  %v780_v8 = vld [vmem:[%s3774_s2 + $0x18] sm:$0xff]  ;;  %v2929_v23 = vpack.c.bf16 %v836_v47, %v835_v22 }
 0x138   : > { %v2883_v40 = vpack.c.bf16 %v780_v8, %v779_v38  ;;  %v821_v38 = vld [vmem:[%s3774_s2 + $0x160] sm:$0xff]  ;;  %v822_v8 = vld [vmem:[%s3774_s2 + $0x168] sm:$0xff] }
 0x139   : > { %1318 = vmatmul.mubr.f32.gmra.mrb[62].mxu0 %v4016_v24  ;;  %2930 = vmatprep.subr.bf16.mxu1 %v2929_v23  ;;  %v2935_v39 = vpack.c.bf16 %v822_v8, %v821_v38 }
 0x13a   : > { %1479 = vmatmul.mubr.f32.gmra.mrb[62].mxu1 %v4016_v24  ;;  %2884 = vmatpush3.bf16.msra.mxu0 %v2883_v40  ;;  %v2897_v24 = vpack.c.bf16 %v804_v21, %v803_v20  ;;  %v807_v40 = vld [vmem:[%s3774_s2 + $0xf0] sm:$0xff] }
 0x13b   : > { %2886 = vmatprep.subr.bf16.mxu0 %v2885_v48  ;;  %2932 = vmatpush3.bf16.msra.mxu1 %v2931_v28  ;;  %v2905_v43 = vpack.c.bf16 %v808_v41, %v807_v40  ;;  %v2937_v48 = vpack.c.bf16 %v840_v44, %v839_v42 }
 0x13c   : > { %2934 = vmatprep.subr.bf16.mxu1 %v2933_v36 }
 0x13e   : > { %2888 = vmatpush3.bf16.msra.mxu0 %v2887_v53 }
 0x13f   : > { %2890 = vmatprep.subr.bf16.mxu0 %v2889_v61  ;;  %2936 = vmatpush3.bf16.msra.mxu1 %v2935_v39 }
 0x140   : > { %2938 = vmatprep.subr.bf16.mxu1 %v2937_v48 }
 0x142   : > { %2892 = vmatpush3.bf16.msra.mxu0 %v2891_v2 }
 0x143   : > { %2894 = vmatprep.subr.bf16.mxu0 %v2893_v11  ;;  %2940 = vmatpush3.bf16.msra.mxu1 %v2939_v52 }
 0x146   : > { %2896 = vmatpush3.bf16.msra.mxu0 %v2895_v16 }
 0x147   : > { %2898 = vmatprep.subr.bf16.mxu0 %v2897_v24 }
 0x14a   : > { %2900 = vmatpush3.bf16.msra.mxu0 %v2899_v25 }
 0x14b   : > { %2902 = vmatprep.subr.bf16.mxu0 %v2901_v32 }
 0x14e   : > { %2904 = vmatpush3.bf16.msra.mxu0 %v2903_v37 }
 0x14f   : > { %2906 = vmatprep.subr.bf16.mxu0 %v2905_v43 }
 0x152   : > { %2908 = vmatpush3.bf16.msra.mxu0 %v2907_v49 }
 0x190   : > { %v4149_v53 = vpop.f32.mrb[0].mxu0 }
 0x191   : > { %v2522_v54 = vmul.f32 -1.442695, %v4149_v53  ;;  %v4152_v55 = vpop.f32.mrb[0].mxu1  ;;  %v4154_v56 = vpop.f32.mrb[1].mxu0 }
 0x192   : > { %v2524_v57 = vmul.f32 -1.442695, %v4152_v55  ;;  %v2523_v58 = vmul.f32 -1.442695, %v4154_v56  ;;  %v4158_v59 = vpop.f32.mrb[1].mxu1 }
 0x193   : > { %3016 = vpow2.f32 %v2522_v54  ;;  %v2525_v61 = vmul.f32 -1.442695, %v4158_v59 }
 0x194   : > { %3018 = vpow2.f32 %v2524_v57  ;;  %v4161_v62 = vpop.f32.mrb[2].mxu0 }
 0x195   : > { %3020 = vpow2.f32 %v2523_v58  ;;  %v2526_v63 = vmul.f32 -1.442695, %v4161_v62  ;;  %v4164_v0 = vpop.f32.mrb[2].mxu1  ;;  %v4166_v1 = vpop.f32.mrb[3].mxu0 }
 0x196   : > { %3022 = vpow2.f32 %v2525_v61  ;;  %v2528_v2 = vmul.f32 -1.442695, %v4164_v0  ;;  %v2527_v3 = vmul.f32 -1.442695, %v4166_v1  ;;  %v4170_v4 = vpop.f32.mrb[3].mxu1 }
 0x197   : > { %3024 = vpow2.f32 %v2526_v63  ;;  %v2529_v5 = vmul.f32 -1.442695, %v4170_v4 }
 0x198   : > { %3026 = vpow2.f32 %v2528_v2  ;;  %v4173_v6 = vpop.f32.mrb[4].mxu0 }
 0x199   : > { %3028 = vpow2.f32 %v2527_v3  ;;  %v2530_v7 = vmul.f32 -1.442695, %v4173_v6  ;;  %v4176_v9 = vpop.f32.mrb[4].mxu1  ;;  %v4178_v11 = vpop.f32.mrb[5].mxu0 }
 0x19a   : > { %3030 = vpow2.f32 %v2529_v5  ;;  %v2532_v12 = vmul.f32 -1.442695, %v4176_v9  ;;  %v2531_v13 = vmul.f32 -1.442695, %v4178_v11  ;;  %v4182_v14 = vpop.f32.mrb[5].mxu1 }
 0x19b   : > { %3032 = vpow2.f32 %v2530_v7  ;;  %v2533_v15 = vmul.f32 -1.442695, %v4182_v14 }
 0x19c   : > { %3034 = vpow2.f32 %v2532_v12  ;;  %v4185_v16 = vpop.f32.mrb[6].mxu0 }
 0x19d   : > { %v3017_v17 = vpop.eup %3016  ;;  %3036 = vpow2.f32 %v2531_v13  ;;  %v2534_v18 = vmul.f32 -1.442695, %v4185_v16  ;;  %v4188_v19 = vpop.f32.mrb[6].mxu1 }
 0x19e   : > { %v4190_v20 = vpop.f32.mrb[7].mxu0  ;;  %v3019_v21 = vpop.eup %3018  ;;  %v1677_v22 = vadd.f32 1.0, %v3017_v17  ;;  %3038 = vpow2.f32 %v2533_v15  ;;  %v2536_v52 = vmul.f32 -1.442695, %v4188_v19 }
 0x19f   : > { %v4192_v24 = vpop.f32.mrb[7].mxu1  ;;  %v3021_v47 = vpop.eup %3020  ;;  %v1679_v60 = vadd.f32 1.0, %v3019_v21  ;;  %3040 = vpow2.f32 %v2534_v18  ;;  %v2535_v63 = vmul.f32 -1.442695, %v4190_v20 }
 0x1a0   : > { %v3023_v10 = vpop.eup %3022  ;;  %3042 = vrcp.f32 %v1677_v22  ;;  %v1678_v23 = vadd.f32 1.0, %v3021_v47  ;;  %v4194_v25 = vpop.f32.mrb[8].mxu0  ;;  %v2537_v5 = vmul.f32 -1.442695, %v4192_v24 }
 0x1a1   : > { %v3025_v26 = vpop.eup %3024  ;;  %3044 = vrcp.f32 %v1679_v60  ;;  %v1680_v27 = vadd.f32 1.0, %v3023_v10  ;;  %v4196_v28 = vpop.f32.mrb[8].mxu1  ;;  %v2538_v12 = vmul.f32 -1.442695, %v4194_v25 }
 0x1a2   : > { %v4198_v29 = vpop.f32.mrb[9].mxu0  ;;  %v3027_v30 = vpop.eup %3026  ;;  %3046 = vrcp.f32 %v1678_v23  ;;  %v1681_v31 = vadd.f32 1.0, %v3025_v26  ;;  %v2540_v17 = vmul.f32 -1.442695, %v4196_v28 }
 0x1a3   : > { %v4200_v32 = vpop.f32.mrb[9].mxu1  ;;  %v3029_v33 = vpop.eup %3028  ;;  %3048 = vrcp.f32 %v1680_v27  ;;  %v1683_v34 = vadd.f32 1.0, %v3027_v30  ;;  %v2539_v47 = vmul.f32 -1.442695, %v4198_v29 }
 0x1a4   : > { %4630 = vst [vmem:[#allocation9_spill] sm:$0xff] %v4200_v32  ;;  %v3031_v35 = vpop.eup %3030  ;;  %3050 = vrcp.f32 %v1681_v31  ;;  %v1682_v36 = vadd.f32 1.0, %v3029_v33  ;;  %v4202_v37 = vpop.f32.mrb[10].mxu0  ;;  %v2541_v23 = vmul.f32 -1.442695, %v4200_v32 }
 0x1a5   : > { %4631 = vst [vmem:[#allocation10_spill] sm:$0xff] %v4202_v37  ;;  %v3033_v38 = vpop.eup %3032  ;;  %3052 = vrcp.f32 %v1683_v34  ;;  %v1684_v8 = vadd.f32 1.0, %v3031_v35  ;;  %v4204_v39 = vpop.f32.mrb[10].mxu1  ;;  %v2542_v27 = vmul.f32 -1.442695, %v4202_v37 }
 0x1a6   : > { %4632 = vst [vmem:[#allocation11_spill] sm:$0xff] %v4204_v39  ;;  %v4206_v40 = vpop.f32.mrb[11].mxu0  ;;  %v3035_v41 = vpop.eup %3034  ;;  %3054 = vrcp.f32 %v1682_v36  ;;  %v1685_v42 = vadd.f32 1.0, %v3033_v38  ;;  %v2544_v33 = vmul.f32 -1.442695, %v4204_v39 }
 0x1a7   : > { %4633 = vst [vmem:[#allocation12_spill] sm:$0xff] %v4206_v40  ;;  %v4208_v43 = vpop.f32.mrb[11].mxu1  ;;  %v3037_v44 = vpop.eup %3036  ;;  %3056 = vrcp.f32 %v1684_v8  ;;  %v1687_v45 = vadd.f32 1.0, %v3035_v41  ;;  %v2543_v38 = vmul.f32 -1.442695, %v4206_v40 }
 0x1a8   : > { %4634 = vst [vmem:[#allocation13_spill] sm:$0xff] %v4208_v43  ;;  %v3039_v46 = vpop.eup %3038  ;;  %3058 = vrcp.f32 %v1685_v42  ;;  %v1686_v48 = vadd.f32 1.0, %v3037_v44  ;;  %v4210_v49 = vpop.f32.mrb[12].mxu0  ;;  %v2545_v42 = vmul.f32 -1.442695, %v4208_v43 }
 0x1a9   : > { %4635 = vst [vmem:[#allocation14_spill] sm:$0xff] %v4210_v49  ;;  %v3041_v50 = vpop.eup %3040  ;;  %3060 = vrcp.f32 %v1687_v45  ;;  %v1688_v51 = vadd.f32 1.0, %v3039_v46  ;;  %v4213_v54 = vpop.f32.mrb[12].mxu1  ;;  %v2546_v45 = vmul.f32 -1.442695, %v4210_v49 }
 0x1aa   : > { %4636 = vst [vmem:[#allocation15_spill] sm:$0xff] %v4213_v54  ;;  %v4215_v57 = vpop.f32.mrb[13].mxu0  ;;  %v4217_v58 = vpop.eup %3042  ;;  %3062 = vrcp.f32 %v1686_v48  ;;  %v1689_v61 = vadd.f32 1.0, %v3041_v50  ;;  %v2548_v50 = vmul.f32 -1.442695, %v4213_v54 }
 0x1ab   : > { %v4220_v2 = vpop.f32.mrb[13].mxu1  ;;  %v4222_v3 = vpop.eup %3044  ;;  %3064 = vrcp.f32 %v1688_v51 }
 0x1ac   : > { %4637 = vst [vmem:[#allocation16_spill] sm:$0xff] %v4220_v2  ;;  %v4225_v7 = vpop.eup %3046  ;;  %3066 = vrcp.f32 %v1689_v61  ;;  %v4228_v13 = vpop.f32.mrb[14].mxu0 }
 0x1ad   : > { %4638 = vst [vmem:[#allocation17_spill] sm:$0xff] %v4228_v13  ;;  %v4230_v15 = vpop.eup %3048  ;;  %3068 = vpow2.f32 %v2536_v52  ;;  %v4233_v18 = vpop.f32.mrb[14].mxu1 }
 0x1ae   : > { %4639 = vst [vmem:[#allocation18_spill] sm:$0xff] %v4233_v18  ;;  %v4235_v21 = vpop.f32.mrb[15].mxu0  ;;  %v4237_v22 = vpop.eup %3050  ;;  %3070 = vpow2.f32 %v2535_v63 }
 0x1af   : > { %4640 = vst [vmem:[#allocation19_spill] sm:$0xff] %v4235_v21  ;;  %v4240_v60 = vpop.f32.mrb[15].mxu1  ;;  %v4242_v10 = vpop.eup %3052  ;;  %3072 = vpow2.f32 %v2537_v5 }
 0x1b0   : > { %4641 = vst [vmem:[#allocation20_spill] sm:$0xff] %v4240_v60  ;;  %v4245_v26 = vpop.eup %3054  ;;  %3074 = vpow2.f32 %v2538_v12  ;;  %v4248_v30 = vpop.f32.mrb[16].mxu0 }
 0x1b1   : > { %4642 = vst [vmem:[#allocation21_spill] sm:$0xff] %v4248_v30  ;;  %v4250_v31 = vpop.eup %3056  ;;  %3076 = vpow2.f32 %v2540_v17  ;;  %v4253_v34 = vpop.f32.mrb[16].mxu1 }
 0x1b2   : > { %4643 = vst [vmem:[#allocation22_spill] sm:$0xff] %v4253_v34  ;;  %v4255_v35 = vpop.f32.mrb[17].mxu0  ;;  %v4257_v36 = vpop.eup %3058  ;;  %3078 = vpow2.f32 %v2539_v47 }
 0x1b3   : > { %4644 = vst [vmem:[#allocation23_spill] sm:$0xff] %v4255_v35  ;;  %v4260_v8 = vpop.f32.mrb[17].mxu1  ;;  %v4262_v41 = vpop.eup %3060  ;;  %3080 = vpow2.f32 %v2541_v23 }
 0x1b4   : > { %4645 = vst [vmem:[#allocation24_spill] sm:$0xff] %v4260_v8  ;;  %v4265_v44 = vpop.eup %3062  ;;  %3082 = vpow2.f32 %v2542_v27  ;;  %v4268_v46 = vpop.f32.mrb[18].mxu0 }
 0x1b5   : > { %4646 = vst [vmem:[#allocation25_spill] sm:$0xff] %v4268_v46  ;;  %v4270_v48 = vpop.eup %3064  ;;  %3084 = vpow2.f32 %v2544_v33  ;;  %v4273_v51 = vpop.f32.mrb[18].mxu1 }
 0x1b6   : > { %4647 = vst [vmem:[#allocation26_spill] sm:$0xff] %v4273_v51  ;;  %v4275_v52 = vpop.f32.mrb[19].mxu0  ;;  %v4277_v61 = vpop.eup %3066  ;;  %3086 = vpow2.f32 %v2543_v38 }
 0x1b7   : > { %4648 = vst [vmem:[#allocation27_spill] sm:$0xff] %v4275_v52  ;;  %v4279_v63 = vpop.f32.mrb[19].mxu1  ;;  %v3069_v5 = vpop.eup %3068  ;;  %3088 = vpow2.f32 %v2545_v42 }
 0x1b8   : > { %v3071_v12 = vpop.eup %3070  ;;  %v1691_v17 = vadd.f32 1.0, %v3069_v5  ;;  %3090 = vpow2.f32 %v2546_v45  ;;  %v4281_v47 = vpop.f32.mrb[20].mxu0 }
 0x1b9   : > { %v3073_v23 = vpop.eup %3072  ;;  %v1690_v27 = vadd.f32 1.0, %v3071_v12  ;;  %3092 = vpow2.f32 %v2548_v50  ;;  %v4283_v33 = vpop.f32.mrb[20].mxu1 }
 0x1ba   : > { %v4285_v54 = vpop.f32.mrb[21].mxu0  ;;  %v3075_v49 = vpop.eup %3074  ;;  %3094 = vrcp.f32 %v1691_v17  ;;  %v1692_v43 = vadd.f32 1.0, %v3073_v23 }
 0x1bb   : > { %4649 = vst [vmem:[#allocation28_spill] sm:$0xff] %v4285_v54  ;;  %v4287_v38 = vpop.f32.mrb[21].mxu1  ;;  %v3077_v40 = vpop.eup %3076  ;;  %3096 = vrcp.f32 %v1690_v27  ;;  %v1693_v42 = vadd.f32 1.0, %v3075_v49 }
 0x1bc   : > { %4650 = vst [vmem:[#allocation29_spill] sm:$0xff] %v4287_v38  ;;  %v3079_v39 = vpop.eup %3078  ;;  %3098 = vrcp.f32 %v1692_v43  ;;  %v1695_v45 = vadd.f32 1.0, %v3077_v40  ;;  %v4289_v5 = vpop.f32.mrb[22].mxu0 }
 0x1bd   : > { %4651 = vst [vmem:[#allocation30_spill] sm:$0xff] %v4289_v5  ;;  %v3081_v37 = vpop.eup %3080  ;;  %3100 = vrcp.f32 %v1693_v42  ;;  %v1694_v50 = vadd.f32 1.0, %v3079_v39  ;;  %v4291_v12 = vpop.f32.mrb[22].mxu1 }
 0x1be   : > { %4652 = vst [vmem:[#allocation31_spill] sm:$0xff] %v4291_v12  ;;  %v4293_v32 = vpop.f32.mrb[23].mxu0  ;;  %v3083_v54 = vpop.eup %3082  ;;  %3102 = vrcp.f32 %v1695_v45  ;;  %v1696_v17 = vadd.f32 1.0, %v3081_v37 }
 0x1bf   : > { %4653 = vst [vmem:[#allocation32_spill] sm:$0xff] %v4293_v32  ;;  %v4295_v23 = vpop.f32.mrb[23].mxu1  ;;  %v3085_v38 = vpop.eup %3084  ;;  %3104 = vrcp.f32 %v1694_v50  ;;  %v1697_v49 = vadd.f32 1.0, %v3083_v54  ;;  %v2547_v50 = vmul.f32 -1.442695, %v4215_v57 }
 0x1c0   : > { %4654 = vst [vmem:[#allocation33_spill] sm:$0xff] %v4295_v23  ;;  %v3087_v27 = vpop.eup %3086  ;;  %3106 = vrcp.f32 %v1696_v17  ;;  %v1699_v40 = vadd.f32 1.0, %v3085_v38  ;;  %v4297_v43 = vpop.f32.mrb[24].mxu0 }
 0x1c1   : > { %v3089_v5 = vpop.eup %3088  ;;  %3108 = vrcp.f32 %v1697_v49  ;;  %v1698_v39 = vadd.f32 1.0, %v3087_v27  ;;  %v4299_v42 = vpop.f32.mrb[24].mxu1  ;;  %v2549_v49 = vmul.f32 -1.442695, %v4220_v2 }
 0x1c2   : > { %4655 = vst [vmem:[#allocation34_spill] sm:$0xff] %v4299_v42  ;;  %v4301_v12 = vpop.f32.mrb[25].mxu0  ;;  %v3091_v32 = vpop.eup %3090  ;;  %3110 = vrcp.f32 %v1699_v40  ;;  %v1700_v37 = vadd.f32 1.0, %v3089_v5  ;;  %v2550_v5 = vmul.f32 -1.442695, %v4228_v13 }
 0x1c3   : > { %4656 = vst [vmem:[#allocation35_spill] sm:$0xff] %v4301_v12  ;;  %v4303_v45 = vpop.f32.mrb[25].mxu1  ;;  %v3093_v23 = vpop.eup %3092  ;;  %3112 = vrcp.f32 %v1698_v39  ;;  %v1701_v54 = vadd.f32 1.0, %v3091_v32  ;;  %v2552_v39 = vmul.f32 -1.442695, %v4233_v18 }
 0x1c4   : > { %4657 = vst [vmem:[#allocation36_spill] sm:$0xff] %v4303_v45  ;;  %v4306_v38 = vpop.eup %3094  ;;  %3114 = vrcp.f32 %v1700_v37  ;;  %v1703_v17 = vadd.f32 1.0, %v3093_v23  ;;  %v4309_v27 = vpop.f32.mrb[26].mxu0 }
 0x1c5   : > { %4658 = vst [vmem:[#allocation37_spill] sm:$0xff] %v4309_v27  ;;  %v4311_v42 = vpop.eup %3096  ;;  %3116 = vrcp.f32 %v1701_v54  ;;  %v4314_v40 = vpop.f32.mrb[26].mxu1  ;;  %v2551_v27 = vmul.f32 -1.442695, %v4235_v21  ;;  %v2553_v54 = vmul.f32 -1.442695, %v4240_v60 }
 0x1c6   : > { %4659 = vst [vmem:[#allocation38_spill] sm:$0xff] %v4314_v40  ;;  %v4316_v45 = vpop.f32.mrb[27].mxu0  ;;  %v4318_v32 = vpop.eup %3098  ;;  %3118 = vrcp.f32 %v1703_v17  ;;  %v2554_v17 = vmul.f32 -1.442695, %v4248_v30 }
 0x1c7   : > { %4660 = vst [vmem:[#allocation39_spill] sm:$0xff] %v4316_v45  ;;  %v4321_v37 = vpop.f32.mrb[27].mxu1  ;;  %v4323_v23 = vpop.eup %3100  ;;  %3120 = vpow2.f32 %v2547_v50  ;;  %v2556_v50 = vmul.f32 -1.442695, %v4253_v34 }
 0x1c8   : > { %4661 = vst [vmem:[#allocation40_spill] sm:$0xff] %v4321_v37  ;;  %v4326_v2 = vpop.eup %3102  ;;  %3122 = vpow2.f32 %v2549_v49  ;;  %v4329_v40 = vpop.f32.mrb[28].mxu0 }
 0x1c9   : > { %4662 = vst [vmem:[#allocation41_spill] sm:$0xff] %v4329_v40  ;;  %v4331_v45 = vpop.eup %3104  ;;  %3124 = vpow2.f32 %v2550_v5  ;;  %v4334_v18 = vpop.f32.mrb[28].mxu1  ;;  %v2555_v40 = vmul.f32 -1.442695, %v4255_v35  ;;  %v2557_v5 = vmul.f32 -1.442695, %v4260_v8 }
 0x1ca   : > { %4663 = vst [vmem:[#allocation42_spill] sm:$0xff] %v4334_v18  ;;  %v4336_v37 = vpop.f32.mrb[29].mxu0  ;;  %v4338_v13 = vpop.eup %3106  ;;  %3126 = vpow2.f32 %v2552_v39  ;;  %v2558_v39 = vmul.f32 -1.442695, %v4268_v46 }
 0x1cb   : > { %4664 = vst [vmem:[#allocation43_spill] sm:$0xff] %v4336_v37  ;;  %v4341_v21 = vpop.f32.mrb[29].mxu1  ;;  %v4343_v49 = vpop.eup %3108  ;;  %3128 = vpow2.f32 %v2551_v27  ;;  %v2560_v27 = vmul.f32 -1.442695, %v4273_v51 }
 0x1cc   : > { %4665 = vst [vmem:[#allocation44_spill] sm:$0xff] %v4341_v21  ;;  %v4346_v60 = vpop.eup %3110  ;;  %3130 = vpow2.f32 %v2553_v54  ;;  %v4349_v18 = vpop.f32.mrb[30].mxu0 }
 0x1cd   : > { %4666 = vst [vmem:[#allocation45_spill] sm:$0xff] %v4349_v18  ;;  %v4351_v37 = vpop.eup %3112  ;;  %3132 = vpow2.f32 %v2554_v17  ;;  %v4354_v34 = vpop.f32.mrb[30].mxu1  ;;  %v1869_v18 = vmul.f32 %v4217_v58, %v4149_v53  ;;  %v2559_v17 = vmul.f32 -1.442695, %v4275_v52  ;;  %v1873_v53 = vmul.f32 %v4237_v22, %v4161_v62 }
 0x1ce   : > { %4667 = vst [vmem:[#allocation46_spill] sm:$0xff] %v4354_v34  ;;  %v4356_v21 = vpop.f32.mrb[31].mxu0  ;;  %v4358_v30 = vpop.eup %3114  ;;  %3134 = vpow2.f32 %v2556_v50  ;;  %v1870_v50 = vmul.f32 %v4225_v7, %v4154_v56  ;;  %v1872_v34 = vmul.f32 %v4230_v15, %v4158_v59  ;;  %v1875_v58 = vmul.f32 %v4242_v10, %v4164_v0 }
 0x1cf   : > { %4668 = vst [vmem:[#allocation47_spill] sm:$0xff] %v4356_v21  ;;  %v4361_v35 = vpop.f32.mrb[31].mxu1  ;;  %v4363_v54 = vpop.eup %3116  ;;  %3136 = vpow2.f32 %v2555_v40  ;;  %v1871_v21 = vmul.f32 %v4222_v3, %v4152_v55  ;;  %v1874_v15 = vmul.f32 %v4245_v26, %v4166_v1  ;;  %v1876_v0 = vmul.f32 %v4250_v31, %v4170_v4 }
 0x1d0   : > { %4669 = vst [vmem:[#allocation48_spill] sm:$0xff] %v4361_v35  ;;  %v4368_v46 = vpop.eup %3118  ;;  %3138 = vpow2.f32 %v2557_v5  ;;  %v1229_v35 = vpop.f32.mrb[32].mxu0 }
 0x1d1   : > { %v3121_v51 = vpop.eup %3120  ;;  %3140 = vpow2.f32 %v2558_v39  ;;  %v1933_v40 = vmul.f32 %v1869_v18, %v1229_v35  ;;  %v1390_v52 = vpop.f32.mrb[32].mxu1  ;;  %v1877_v18 = vmul.f32 %v4257_v36, %v4173_v6  ;;  %v1878_v39 = vmul.f32 %v4265_v44, %v4178_v11 }
 0x1d2   : > { %v1231_v8 = vpop.f32.mrb[33].mxu0  ;;  %v3123_v55 = vpop.eup %3122  ;;  %v1702_v3 = vadd.f32 1.0, %v3121_v51  ;;  %3142 = vpow2.f32 %v2560_v27  ;;  %v1935_v56 = vmul.f32 %v1871_v21, %v1390_v52 }
 0x1d3   : > { %v1934_v7 = vmul.f32 %v1870_v50, %v1231_v8  ;;  %v1392_v12 = vpop.f32.mrb[33].mxu1  ;;  %v3125_v59 = vpop.eup %3124  ;;  %v1704_v5 = vadd.f32 1.0, %v3123_v55  ;;  %3144 = vpow2.f32 %v2559_v17  ;;  %v1879_v8 = vmul.f32 %v4262_v41, %v4176_v9 }
 0x1d4   : > { %v1936_v62 = vmul.f32 %v1872_v34, %v1392_v12  ;;  %v3127_v22 = vpop.eup %3126  ;;  %3146 = vrcp.f32 %v1702_v3  ;;  %v1705_v10 = vadd.f32 1.0, %v3125_v59  ;;  %v1235_v35 = vpop.f32.mrb[34].mxu0  ;;  %v1880_v17 = vmul.f32 %v4270_v48, %v4182_v14 }
 0x1d5   : > { %2077 = vmatprep.mubr.f32.mxu0 %v1934_v7  ;;  %v3129_v21 = vpop.eup %3128  ;;  %3148 = vrcp.f32 %v1704_v5  ;;  %v1707_v1 = vadd.f32 1.0, %v3127_v22  ;;  %v1937_v26 = vmul.f32 %v1873_v53, %v1235_v35  ;;  %v1396_v51 = vpop.f32.mrb[34].mxu1  ;;  %v1881_v50 = vmul.f32 %v4277_v61, %v4185_v16 }
 0x1d6   : > { %2222 = vmatprep.mubr.f32.mxu1 %v1936_v62  ;;  %v1237_v34 = vpop.f32.mrb[35].mxu0  ;;  %2078 = vmatmul.mubr.f32.vlgmr.msra.gmra.mrb[64].mxu0 %v1933_v40  ;;  %v3131_v52 = vpop.eup %3130  ;;  %3150 = vrcp.f32 %v1705_v10  ;;  %v1706_v4 = vadd.f32 1.0, %v3129_v21  ;;  %v1939_v31 = vmul.f32 %v1875_v58, %v1396_v51  ;;  %v2561_v3 = vmul.f32 -1.442695, %v4279_v63 }
 0x1d7   : > { %v1938_v6 = vmul.f32 %v1874_v15, %v1237_v34  ;;  %v1398_v36 = vpop.f32.mrb[35].mxu1  ;;  %2223 = vmatmul.mubr.f32.vlgmr.msra.gmra.mrb[64].mxu1 %v1935_v56  ;;  %v3133_v12 = vpop.eup %3132  ;;  %3152 = vrcp.f32 %v1707_v1  ;;  %v1708_v9 = vadd.f32 1.0, %v3131_v52  ;;  %v2562_v5 = vmul.f32 -1.442695, %v4281_v47 }
 0x1d8   : > { %v1940_v41 = vmul.f32 %v1876_v0, %v1398_v36  ;;  %v3135_v27 = vpop.eup %3134  ;;  %3154 = vrcp.f32 %v1706_v4  ;;  %v1709_v53 = vadd.f32 1.0, %v3133_v12  ;;  %v1241_v58 = vpop.f32.mrb[36].mxu0  ;;  %v1883_v0 = vmul.f32 %v4306_v38, %v4188_v19 }
 0x1d9   : > { %2082 = vmatprep.mubr.f32.mxu0 %v1938_v6  ;;  %v3137_v40 = vpop.eup %3136  ;;  %3156 = vrcp.f32 %v1708_v9  ;;  %v1711_v55 = vadd.f32 1.0, %v3135_v27  ;;  %v1941_v11 = vmul.f32 %v1877_v18, %v1241_v58  ;;  %v1402_v44 = vpop.f32.mrb[36].mxu1  ;;  %v1882_v18 = vmul.f32 %v4311_v42, %v4190_v20 }
 0x1da   : > { %2227 = vmatprep.mubr.f32.mxu1 %v1940_v41  ;;  %v1243_v56 = vpop.f32.mrb[37].mxu0  ;;  %2083 = vmatmul.mubr.f32.gmra.mrb[66].mxu0 %v1937_v26  ;;  %v3139_v7 = vpop.eup %3138  ;;  %3158 = vrcp.f32 %v1709_v53  ;;  %v1710_v14 = vadd.f32 1.0, %v3137_v40  ;;  %v1943_v48 = vmul.f32 %v1879_v8, %v1402_v44  ;;  %v1884_v8 = vmul.f32 %v4318_v32, %v4192_v24 }
 0x1db   : > { %v1942_v59 = vmul.f32 %v1878_v39, %v1243_v56  ;;  %v1404_v16 = vpop.f32.mrb[37].mxu1  ;;  %2228 = vmatmul.mubr.f32.gmra.mrb[66].mxu1 %v1939_v31  ;;  %v3141_v61 = vpop.eup %3140  ;;  %3160 = vrcp.f32 %v1711_v55  ;;  %v1712_v15 = vadd.f32 1.0, %v3139_v7  ;;  %v1885_v24 = vmul.f32 %v4323_v23, %v4194_v25  ;;  %v4670_v39 = vld [vmem:[#allocation28_spill] sm:$0xff]  ;;  %v4671_v25 = vld [vmem:[#allocation9_spill] sm:$0xff]  ;;  %v4675_v56 = vld [vmem:[#allocation31_spill] sm:$0xff] }
 0x1dc   : > { %v1944_v62 = vmul.f32 %v1880_v17, %v1404_v16  ;;  %v3143_v22 = vpop.eup %3142  ;;  %3162 = vrcp.f32 %v1710_v14  ;;  %v1713_v10 = vadd.f32 1.0, %v3141_v61  ;;  %v1247_v35 = vpop.f32.mrb[38].mxu0  ;;  %v2564_v32 = vmul.f32 -1.442695, %v4283_v33  ;;  %v4672_v17 = vld [vmem:[#allocation29_spill] sm:$0xff]  ;;  %v4677_v61 = vld [vmem:[#allocation12_spill] sm:$0xff] }
 0x1dd   : > { %2087 = vmatprep.mubr.f32.mxu0 %v1942_v59  ;;  %v3145_v21 = vpop.eup %3144  ;;  %3164 = vrcp.f32 %v1712_v15  ;;  %v1715_v1 = vadd.f32 1.0, %v3143_v22  ;;  %v1945_v26 = vmul.f32 %v1881_v50, %v1247_v35  ;;  %v1408_v51 = vpop.f32.mrb[38].mxu1  ;;  %v1887_v36 = vmul.f32 %v4326_v2, %v4196_v28  ;;  %v4676_v59 = vld [vmem:[#allocation11_spill] sm:$0xff] }
 0x1de   : > { %2232 = vmatprep.mubr.f32.mxu1 %v1944_v62  ;;  %v1249_v34 = vpop.f32.mrb[39].mxu0  ;;  %2088 = vmatmul.mubr.f32.gmra.mrb[68].mxu0 %v1941_v11  ;;  %v4402_v52 = vpop.eup %3146  ;;  %3166 = vrcp.f32 %v1713_v10  ;;  %v1714_v19 = vadd.f32 1.0, %v3145_v21  ;;  %v1947_v20 = vmul.f32 %v1883_v0, %v1408_v51  ;;  %v1886_v12 = vmul.f32 %v4331_v45, %v4198_v29  ;;  %v4673_v29 = vld [vmem:[#allocation30_spill] sm:$0xff]  ;;  %v4680_v10 = vld [vmem:[#allocation33_spill] sm:$0xff] }
 0x1df   : > { %v1946_v42 = vmul.f32 %v1882_v18, %v1249_v34  ;;  %v1410_v38 = vpop.f32.mrb[39].mxu1  ;;  %2233 = vmatmul.mubr.f32.gmra.mrb[68].mxu1 %v1943_v48  ;;  %v4404_v4 = vpop.eup %3148  ;;  %3168 = vrcp.f32 %v1715_v1  ;;  %v2563_v9 = vmul.f32 -1.442695, %v4670_v39  ;;  %v1888_v23 = vmul.f32 %v4338_v13, %v4671_v25  ;;  %v4674_v13 = vld [vmem:[#allocation10_spill] sm:$0xff] }
 0x1e0   : > { %v1948_v31 = vmul.f32 %v1884_v8, %v1410_v38  ;;  %v4409_v6 = vpop.eup %3150  ;;  %3170 = vrcp.f32 %v1714_v19  ;;  %v1253_v41 = vpop.f32.mrb[40].mxu0  ;;  %v2565_v50 = vmul.f32 -1.442695, %v4672_v17  ;;  %v2566_v45 = vmul.f32 -1.442695, %v4673_v29 }
 0x1e1   : > { %2092 = vmatprep.mubr.f32.mxu0 %v1946_v42  ;;  %v4416_v27 = vpop.eup %3152  ;;  %3172 = vpow2.f32 %v2561_v3  ;;  %v1949_v53 = vmul.f32 %v1885_v24, %v1253_v41  ;;  %v1414_v58 = vpop.f32.mrb[40].mxu1  ;;  %v1889_v3 = vmul.f32 %v4343_v49, %v4674_v13  ;;  %v2568_v7 = vmul.f32 -1.442695, %v4675_v56  ;;  %v4679_v49 = vld [vmem:[#allocation13_spill] sm:$0xff]  ;;  %v4682_v42 = vld [vmem:[#allocation34_spill] sm:$0xff] }
 0x1e2   : > { %2237 = vmatprep.mubr.f32.mxu1 %v1948_v31  ;;  %v1255_v28 = vpop.f32.mrb[41].mxu0  ;;  %2093 = vmatmul.mubr.f32.gmra.mrb[70].mxu0 %v1945_v26  ;;  %v4421_v2 = vpop.eup %3154  ;;  %3174 = vpow2.f32 %v2562_v5  ;;  %v1951_v40 = vmul.f32 %v1887_v36, %v1414_v58  ;;  %v1891_v16 = vmul.f32 %v4346_v60, %v4676_v59  ;;  %v1890_v15 = vmul.f32 %v4351_v37, %v4677_v61  ;;  %v4678_v5 = vld [vmem:[#allocation32_spill] sm:$0xff]  ;;  %v4683_v31 = vld [vmem:[#allocation15_spill] sm:$0xff]  ;;  %v4687_v13 = vld [vmem:[#allocation17_spill] sm:$0xff] }
 0x1e3   : > { %v1950_v55 = vmul.f32 %v1886_v12, %v1255_v28  ;;  %v1416_v11 = vpop.f32.mrb[41].mxu1  ;;  %2238 = vmatmul.mubr.f32.gmra.mrb[70].mxu1 %v1947_v20  ;;  %v4424_v44 = vpop.eup %3156  ;;  %3176 = vpow2.f32 %v2564_v32  ;;  %v2567_v62 = vmul.f32 -1.442695, %v4678_v5  ;;  %v1892_v18 = vmul.f32 %v4358_v30, %v4679_v49  ;;  %v4681_v30 = vld [vmem:[#allocation14_spill] sm:$0xff]  ;;  %v4690_v49 = vld [vmem:[#allocation20_spill] sm:$0xff] }
 0x1e4   : > { %v1952_v14 = vmul.f32 %v1888_v23, %v1416_v11  ;;  %v4429_v48 = vpop.eup %3158  ;;  %3178 = vpow2.f32 %v2563_v9  ;;  %v1259_v22 = vpop.f32.mrb[42].mxu0  ;;  %v2569_v35 = vmul.f32 -1.442695, %v4680_v10  ;;  %v2570_v37 = vmul.f32 -1.442695, %v4297_v43  ;;  %v4684_v9 = vld [vmem:[#allocation35_spill] sm:$0xff] }
 0x1e5   : > { %2097 = vmatprep.mubr.f32.mxu0 %v1950_v55  ;;  %v4436_v0 = vpop.eup %3160  ;;  %3180 = vpow2.f32 %v2565_v50  ;;  %v1953_v21 = vmul.f32 %v1889_v3, %v1259_v22  ;;  %v1420_v8 = vpop.f32.mrb[42].mxu1  ;;  %v1893_v20 = vmul.f32 %v4363_v54, %v4681_v30  ;;  %v2572_v38 = vmul.f32 -1.442695, %v4682_v42  ;;  %v4685_v54 = vld [vmem:[#allocation16_spill] sm:$0xff] }
 0x1e6   : > { %2242 = vmatprep.mubr.f32.mxu1 %v1952_v14  ;;  %v1261_v60 = vpop.f32.mrb[43].mxu0  ;;  %2098 = vmatmul.mubr.f32.gmra.mrb[72].mxu0 %v1949_v53  ;;  %v4441_v1 = vpop.eup %3162  ;;  %3182 = vpow2.f32 %v2566_v45  ;;  %v1955_v26 = vmul.f32 %v1891_v16, %v1420_v8  ;;  %v1895_v36 = vmul.f32 %v4368_v46, %v4683_v31  ;;  %v1894_v12 = vmul.f32 %v4402_v52, %v4215_v57  ;;  %v4686_v53 = vld [vmem:[#allocation36_spill] sm:$0xff]  ;;  %v4688_v14 = vld [vmem:[#allocation18_spill] sm:$0xff]  ;;  %v4689_v16 = vld [vmem:[#allocation19_spill] sm:$0xff] }
 0x1e7   : > { %v1954_v51 = vmul.f32 %v1890_v15, %v1261_v60  ;;  %v1422_v34 = vpop.f32.mrb[43].mxu1  ;;  %2243 = vmatmul.mubr.f32.gmra.mrb[72].mxu1 %v1951_v40  ;;  %v4444_v19 = vpop.eup %3164  ;;  %3184 = vpow2.f32 %v2568_v7  ;;  %v2571_v41 = vmul.f32 -1.442695, %v4684_v9  ;;  %v1896_v50 = vmul.f32 %v4404_v4, %v4685_v54 }
 0x1e8   : > { %v1956_v24 = vmul.f32 %v1892_v18, %v1422_v34  ;;  %v4449_v32 = vpop.eup %3166  ;;  %3186 = vpow2.f32 %v2567_v62  ;;  %v1265_v25 = vpop.f32.mrb[44].mxu0  ;;  %v2573_v58 = vmul.f32 -1.442695, %v4686_v53  ;;  %v1897_v3 = vmul.f32 %v4409_v6, %v4687_v13  ;;  %v4691_v34 = vld [vmem:[#allocation21_spill] sm:$0xff] }
 0x1e9   : > { %2102 = vmatprep.mubr.f32.mxu0 %v1954_v51  ;;  %v4456_v23 = vpop.eup %3168  ;;  %3188 = vpow2.f32 %v2569_v35  ;;  %v1957_v28 = vmul.f32 %v1893_v20, %v1265_v25  ;;  %v1426_v45 = vpop.f32.mrb[44].mxu1  ;;  %v1899_v59 = vmul.f32 %v4416_v27, %v4688_v14  ;;  %v1898_v61 = vmul.f32 %v4421_v2, %v4689_v16  ;;  %v4695_v13 = vld [vmem:[#allocation25_spill] sm:$0xff]  ;;  %v4696_v14 = vld [vmem:[#allocation26_spill] sm:$0xff]  ;;  %v4697_v16 = vld [vmem:[#allocation27_spill] sm:$0xff] }
 0x1ea   : > { %2247 = vmatprep.mubr.f32.mxu1 %v1956_v24  ;;  %v1267_v46 = vpop.f32.mrb[45].mxu0  ;;  %2103 = vmatmul.mubr.f32.gmra.mrb[74].mxu0 %v1953_v21  ;;  %v4461_v40 = vpop.eup %3170  ;;  %3190 = vpow2.f32 %v2570_v37  ;;  %v1959_v57 = vmul.f32 %v1895_v36, %v1426_v45  ;;  %v1900_v18 = vmul.f32 %v4424_v44, %v4690_v49  ;;  %v1901_v30 = vmul.f32 %v4429_v48, %v4691_v34  ;;  %v4692_v24 = vld [vmem:[#allocation22_spill] sm:$0xff]  ;;  %v4693_v36 = vld [vmem:[#allocation23_spill] sm:$0xff] }
 0x1eb   : > { %v1958_v52 = vmul.f32 %v1894_v12, %v1267_v46  ;;  %v1428_v55 = vpop.f32.mrb[45].mxu1  ;;  %2248 = vmatmul.mubr.f32.gmra.mrb[74].mxu1 %v1955_v26  ;;  %v3173_v11 = vpop.eup %3172  ;;  %3192 = vpow2.f32 %v2572_v38  ;;  %v1903_v31 = vmul.f32 %v4436_v0, %v4692_v24  ;;  %v1902_v12 = vmul.f32 %v4441_v1, %v4693_v36  ;;  %v4699_v34 = vld [vmem:[#allocation38_spill] sm:$0xff]  ;;  %v4700_v24 = vld [vmem:[#allocation39_spill] sm:$0xff] }
 0x1ec   : > { %v1960_v4 = vmul.f32 %v1896_v50, %v1428_v55  ;;  %v3175_v7 = vpop.eup %3174  ;;  %v1716_v15 = vadd.f32 1.0, %v3173_v11  ;;  %3194 = vpow2.f32 %v2571_v41  ;;  %v1271_v62 = vpop.f32.mrb[46].mxu0  ;;  %v4694_v50 = vld [vmem:[#allocation24_spill] sm:$0xff] }
 0x1ed   : > { %2107 = vmatprep.mubr.f32.mxu0 %v1958_v52  ;;  %v3177_v22 = vpop.eup %3176  ;;  %v1717_v35 = vadd.f32 1.0, %v3175_v7  ;;  %3196 = vpow2.f32 %v2573_v58  ;;  %v1961_v6 = vmul.f32 %v1897_v3, %v1271_v62  ;;  %v1432_v21 = vpop.f32.mrb[46].mxu1  ;;  %v1904_v58 = vmul.f32 %v4444_v19, %v4694_v50 }
 0x1ee   : > { %2252 = vmatprep.mubr.f32.mxu1 %v1960_v4  ;;  %v1273_v8 = vpop.f32.mrb[47].mxu0  ;;  %2108 = vmatmul.mubr.f32.gmra.mrb[76].mxu0 %v1957_v28  ;;  %v3179_v60 = vpop.eup %3178  ;;  %3198 = vrcp.f32 %v1716_v15  ;;  %v1719_v27 = vadd.f32 1.0, %v3177_v22  ;;  %v1963_v37 = vmul.f32 %v1899_v59, %v1432_v21  ;;  %v1905_v3 = vmul.f32 %v4449_v32, %v4695_v13 }
 0x1ef   : > { %v1962_v2 = vmul.f32 %v1898_v61, %v1273_v8  ;;  %v1434_v26 = vpop.f32.mrb[47].mxu1  ;;  %2253 = vmatmul.mubr.f32.gmra.mrb[76].mxu1 %v1959_v57  ;;  %v3181_v51 = vpop.eup %3180  ;;  %3200 = vrcp.f32 %v1717_v35  ;;  %v1718_v44 = vadd.f32 1.0, %v3179_v60  ;;  %v1907_v59 = vmul.f32 %v4456_v23, %v4696_v14 }
 0x1f0   : > { %v1964_v20 = vmul.f32 %v1900_v18, %v1434_v26  ;;  %v3183_v38 = vpop.eup %3182  ;;  %3202 = vrcp.f32 %v1719_v27  ;;  %v1720_v41 = vadd.f32 1.0, %v3181_v51  ;;  %v1277_v25 = vpop.f32.mrb[48].mxu0  ;;  %v1906_v61 = vmul.f32 %v4461_v40, %v4697_v16 }
 0x1f1   : > { %2112 = vmatprep.mubr.f32.mxu0 %v1962_v2  ;;  %v3185_v54 = vpop.eup %3184  ;;  %3204 = vrcp.f32 %v1718_v44  ;;  %v1721_v48 = vadd.f32 1.0, %v3183_v38  ;;  %v1965_v28 = vmul.f32 %v1901_v30, %v1277_v25  ;;  %v1438_v45 = vpop.f32.mrb[48].mxu1  ;;  %v2576_v30 = vmul.f32 -1.442695, %v4699_v34 }
 0x1f2   : > { %2257 = vmatprep.mubr.f32.mxu1 %v1964_v20  ;;  %v1279_v46 = vpop.f32.mrb[49].mxu0  ;;  %2113 = vmatmul.mubr.f32.gmra.mrb[78].mxu0 %v1961_v6  ;;  %v3187_v57 = vpop.eup %3186  ;;  %3206 = vrcp.f32 %v1720_v41  ;;  %v1723_v0 = vadd.f32 1.0, %v3185_v54  ;;  %v1967_v52 = vmul.f32 %v1903_v31, %v1438_v45  ;;  %v2575_v31 = vmul.f32 -1.442695, %v4700_v24  ;;  %v4701_v54 = vld [vmem:[#allocation40_spill] sm:$0xff]  ;;  %v4702_v45 = vld [vmem:[#allocation41_spill] sm:$0xff] }
 0x1f3   : > { %v1966_v1 = vmul.f32 %v1902_v12, %v1279_v46  ;;  %v1440_v55 = vpop.f32.mrb[49].mxu1  ;;  %2258 = vmatmul.mubr.f32.gmra.mrb[78].mxu1 %v1963_v37  ;;  %v3189_v11 = vpop.eup %3188  ;;  %3208 = vrcp.f32 %v1721_v48  ;;  %v1722_v19 = vadd.f32 1.0, %v3187_v57  ;;  %v4698_v37 = vld [vmem:[#allocation37_spill] sm:$0xff]  ;;  %v2577_v50 = vmul.f32 -1.442695, %v4701_v54 }
 0x1f4   : > { %v1968_v4 = vmul.f32 %v1904_v58, %v1440_v55  ;;  %v3191_v7 = vpop.eup %3190  ;;  %3210 = vrcp.f32 %v1723_v0  ;;  %v1724_v15 = vadd.f32 1.0, %v3189_v11  ;;  %v1283_v62 = vpop.f32.mrb[50].mxu0  ;;  %v2574_v2 = vmul.f32 -1.442695, %v4698_v37 }
 0x1f5   : > { %2117 = vmatprep.mubr.f32.mxu0 %v1966_v1  ;;  %v3193_v22 = vpop.eup %3192  ;;  %3212 = vrcp.f32 %v1722_v19  ;;  %v1725_v49 = vadd.f32 1.0, %v3191_v7  ;;  %v1969_v18 = vmul.f32 %v1905_v3, %v1283_v62  ;;  %v1444_v35 = vpop.f32.mrb[50].mxu1  ;;  %v2578_v46 = vmul.f32 -1.442695, %v4702_v45  ;;  %v4704_v3 = vld [vmem:[#allocation43_spill] sm:$0xff] }
 0x1f6   : > { %2262 = vmatprep.mubr.f32.mxu1 %v1968_v4  ;;  %v1285_v32 = vpop.f32.mrb[51].mxu0  ;;  %2118 = vmatmul.mubr.f32.gmra.mrb[80].mxu0 %v1965_v28  ;;  %v3195_v6 = vpop.eup %3194  ;;  %3214 = vrcp.f32 %v1724_v15  ;;  %v1727_v21 = vadd.f32 1.0, %v3193_v22  ;;  %v1971_v8 = vmul.f32 %v1907_v59, %v1444_v35  ;;  %v2579_v19 = vmul.f32 -1.442695, %v4704_v3 }
 0x1f7   : > { %v1970_v23 = vmul.f32 %v1906_v61, %v1285_v32  ;;  %v1446_v60 = vpop.f32.mrb[51].mxu1  ;;  %2263 = vmatmul.mubr.f32.gmra.mrb[80].mxu1 %v1967_v52  ;;  %v3197_v40 = vpop.eup %3196  ;;  %3216 = vrcp.f32 %v1725_v49  ;;  %v1726_v27 = vadd.f32 1.0, %v3195_v6  ;;  %v4703_v52 = vld [vmem:[#allocation42_spill] sm:$0xff] }
 0x1f8   : > { %v3199_v26 = vpop.eup %3198  ;;  %3218 = vrcp.f32 %v1727_v21  ;;  %v1728_v51 = vadd.f32 1.0, %v3197_v40  ;;  %v1289_v44 = vpop.f32.mrb[52].mxu0  ;;  %v2580_v1 = vmul.f32 -1.442695, %v4703_v52  ;;  %v4707_v6 = vld [vmem:[#allocation46_spill] sm:$0xff]  ;;  %v4708_v40 = vld [vmem:[#allocation47_spill] sm:$0xff] }
 0x1f9   : > { %2122 = vmatprep.mubr.f32.mxu0 %v1970_v23  ;;  %v3201_v20 = vpop.eup %3200  ;;  %v1908_v38 = vmul.f32 %v3199_v26, %v4279_v63  ;;  %3220 = vrcp.f32 %v1726_v27  ;;  %v1450_v36 = vpop.f32.mrb[52].mxu1  ;;  %v2584_v21 = vmul.f32 -1.442695, %v4707_v6  ;;  %v2583_v27 = vmul.f32 -1.442695, %v4708_v40 }
 0x1fa   : > { %v1291_v12 = vpop.f32.mrb[53].mxu0  ;;  %2123 = vmatmul.mubr.f32.gmra.mrb[82].mxu0 %v1969_v18  ;;  %v3203_v41 = vpop.eup %3202  ;;  %v1909_v25 = vmul.f32 %v3201_v20, %v4281_v47  ;;  %3222 = vrcp.f32 %v1728_v51 }
 0x1fb   : > { %v1452_v58 = vpop.f32.mrb[53].mxu1  ;;  %v3205_v48 = vpop.eup %3204  ;;  %v1911_v28 = vmul.f32 %v3203_v41, %v4283_v33  ;;  %3224 = vpow2.f32 %v2574_v2  ;;  %v1972_v63 = vmul.f32 %v1908_v38, %v1446_v60 }
 0x1fc   : > { %v3207_v57 = vpop.eup %3206  ;;  %v1910_v0 = vmul.f32 %v3205_v48, %v4670_v39  ;;  %3226 = vpow2.f32 %v2576_v30  ;;  %v1973_v55 = vmul.f32 %v1909_v25, %v1289_v44  ;;  %v1295_v11 = vpop.f32.mrb[54].mxu0  ;;  %v4705_v39 = vld [vmem:[#allocation44_spill] sm:$0xff] }
 0x1fd   : > { %v3209_v47 = vpop.eup %3208  ;;  %v1912_v13 = vmul.f32 %v3207_v57, %v4672_v17  ;;  %3228 = vpow2.f32 %v2575_v31  ;;  %v1975_v4 = vmul.f32 %v1911_v28, %v1450_v36  ;;  %2267 = vmatprep.mubr.f32.mxu1 %v1972_v63  ;;  %v1456_v33 = vpop.f32.mrb[54].mxu1  ;;  %v2581_v16 = vmul.f32 -1.442695, %v4705_v39  ;;  %v4706_v17 = vld [vmem:[#allocation45_spill] sm:$0xff]  ;;  %v4709_v30 = vld [vmem:[#allocation48_spill] sm:$0xff] }
 0x1fe   : > { %v1297_v7 = vpop.f32.mrb[55].mxu0  ;;  %v3211_v14 = vpop.eup %3210  ;;  %v1913_v59 = vmul.f32 %v3209_v47, %v4673_v29  ;;  %3230 = vpow2.f32 %v2577_v50  ;;  %v1974_v61 = vmul.f32 %v1910_v0, %v1291_v12  ;;  %2268 = vmatmul.mubr.f32.gmra.mrb[82].mxu1 %v1971_v8  ;;  %v2582_v49 = vmul.f32 -1.442695, %v4706_v17 }
 0x1ff   : > { %v1458_v15 = vpop.f32.mrb[55].mxu1  ;;  %v3213_v62 = vpop.eup %3212  ;;  %v1915_v22 = vmul.f32 %v3211_v14, %v4675_v56  ;;  %3232 = vpow2.f32 %v2578_v46  ;;  %v1976_v18 = vmul.f32 %v1912_v13, %v1452_v58  ;;  %v2585_v44 = vmul.f32 -1.442695, %v4709_v30 }
 0x200   : > { %v3215_v35 = vpop.eup %3214  ;;  %v1914_v32 = vmul.f32 %v3213_v62, %v4678_v5  ;;  %3234 = vpow2.f32 %v2580_v1  ;;  %v1977_v29 = vmul.f32 %v1913_v59, %v1295_v11  ;;  %2127 = vmatprep.mubr.f32.mxu0 %v1974_v61  ;;  %v1301_v23 = vpop.f32.mrb[56].mxu0 }
 0x201   : > { %v3217_v60 = vpop.eup %3216  ;;  %v1916_v8 = vmul.f32 %v3215_v35, %v4680_v10  ;;  %3236 = vpow2.f32 %v2579_v19  ;;  %v1979_v56 = vmul.f32 %v1915_v22, %v1456_v33  ;;  %2272 = vmatprep.mubr.f32.mxu1 %v1976_v18  ;;  %2128 = vmatmul.mubr.f32.gmra.mrb[84].mxu0 %v1973_v55  ;;  %v1462_v2 = vpop.f32.mrb[56].mxu1 }
 0x202   : > { %v1303_v26 = vpop.f32.mrb[57].mxu0  ;;  %v3219_v51 = vpop.eup %3218  ;;  %v1917_v5 = vmul.f32 %v3217_v60, %v4297_v43  ;;  %3238 = vpow2.f32 %v2581_v16  ;;  %v1978_v20 = vmul.f32 %v1914_v32, %v1297_v7  ;;  %2273 = vmatmul.mubr.f32.gmra.mrb[84].mxu1 %v1975_v4 }
 0x203   : > { %v1464_v38 = vpop.f32.mrb[57].mxu1  ;;  %v3221_v31 = vpop.eup %3220  ;;  %v1919_v10 = vmul.f32 %v3219_v51, %v4682_v42  ;;  %3240 = vpow2.f32 %v2582_v49  ;;  %v1980_v36 = vmul.f32 %v1916_v8, %v1458_v15 }
 0x204   : > { %v3223_v12 = vpop.eup %3222  ;;  %v1918_v41 = vmul.f32 %v3221_v31, %v4684_v9  ;;  %3242 = vpow2.f32 %v2584_v21  ;;  %v1981_v25 = vmul.f32 %v1917_v5, %v1301_v23  ;;  %2132 = vmatprep.mubr.f32.mxu0 %v1978_v20  ;;  %v4509_v50 = vpop.f32.mrb[58].mxu0 }
 0x205   : > { %v3225_v43 = vpop.eup %3224  ;;  %v1920_v58 = vmul.f32 %v3223_v12, %v4686_v53  ;;  %3244 = vpow2.f32 %v2583_v27  ;;  %v1983_v48 = vmul.f32 %v1919_v10, %v1462_v2  ;;  %2277 = vmatprep.mubr.f32.mxu1 %v1980_v36  ;;  %2133 = vmatmul.mubr.f32.gmra.mrb[86].mxu0 %v1977_v29  ;;  %v4512_v28 = vpop.f32.mrb[58].mxu1 }
 0x206   : > { %v4514_v42 = vpop.f32.mrb[59].mxu0  ;;  %v3227_v46 = vpop.eup %3226  ;;  %v1729_v63 = vadd.f32 1.0, %v3225_v43  ;;  %3246 = vpow2.f32 %v2585_v44  ;;  %v1982_v9 = vmul.f32 %v1918_v41, %v1303_v26  ;;  %2278 = vmatmul.mubr.f32.gmra.mrb[86].mxu1 %v1979_v56 }
 0x207   : > { %v4516_v57 = vpop.f32.mrb[59].mxu1  ;;  %v3229_v0 = vpop.eup %3228  ;;  %v1731_v1 = vadd.f32 1.0, %v3227_v46  ;;  %v1984_v55 = vmul.f32 %v1920_v58, %v1464_v38 }
 0x208   : > { %v3231_v11 = vpop.eup %3230  ;;  %3248 = vrcp.f32 %v1729_v63  ;;  %v1730_v53 = vadd.f32 1.0, %v3229_v0  ;;  %2137 = vmatprep.mubr.f32.mxu0 %v1982_v9  ;;  %v1313_v47 = vpop.f32.mrb[60].mxu0 }
 0x209   : > { %v3233_v13 = vpop.eup %3232  ;;  %3250 = vrcp.f32 %v1731_v1  ;;  %v1732_v19 = vadd.f32 1.0, %v3231_v11  ;;  %2282 = vmatprep.mubr.f32.mxu1 %v1984_v55  ;;  %2138 = vmatmul.mubr.f32.gmra.mrb[88].mxu0 %v1981_v25  ;;  %v1474_v4 = vpop.f32.mrb[60].mxu1 }
 0x20a   : > { %v1315_v33 = vpop.f32.mrb[61].mxu0  ;;  %v3235_v7 = vpop.eup %3234  ;;  %3252 = vrcp.f32 %v1730_v53  ;;  %v1733_v14 = vadd.f32 1.0, %v3233_v13  ;;  %2283 = vmatmul.mubr.f32.gmra.mrb[88].mxu1 %v1983_v48 }
 0x20b   : > { %v1476_v59 = vpop.f32.mrb[61].mxu1  ;;  %v3237_v16 = vpop.eup %3236  ;;  %3254 = vrcp.f32 %v1732_v19  ;;  %v1735_v61 = vadd.f32 1.0, %v3235_v7 }
 0x20c   : > { %v3239_v15 = vpop.eup %3238  ;;  %3256 = vrcp.f32 %v1733_v14  ;;  %v1734_v62 = vadd.f32 1.0, %v3237_v16  ;;  %v1319_v22 = vpop.f32.mrb[62].mxu0 }
 0x20d   : > { %v3241_v49 = vpop.eup %3240  ;;  %3258 = vrcp.f32 %v1735_v61  ;;  %v1736_v18 = vadd.f32 1.0, %v3239_v15  ;;  %v1480_v35 = vpop.f32.mrb[62].mxu1 }
 0x20e   : > { %v1321_v32 = vpop.f32.mrb[63].mxu0  ;;  %v3243_v21 = vpop.eup %3242  ;;  %3260 = vrcp.f32 %v1734_v62  ;;  %v1737_v29 = vadd.f32 1.0, %v3241_v49 }
 0x20f   : > { %v1482_v23 = vpop.f32.mrb[63].mxu1  ;;  %v3245_v60 = vpop.eup %3244  ;;  %3262 = vrcp.f32 %v1736_v18  ;;  %v1739_v8 = vadd.f32 1.0, %v3243_v21 }
 0x210   : > { %v3247_v27 = vpop.eup %3246  ;;  %3264 = vrcp.f32 %v1737_v29  ;;  %v1738_v56 = vadd.f32 1.0, %v3245_v60 }
 0x211   : > { %3266 = vrcp.f32 %v1739_v8  ;;  %v1740_v2 = vadd.f32 1.0, %v3247_v27  ;;  %v1999_v8 = vld [vmem:[#allocation2 + $0x10] sm:$0xff] }
 0x212   : > { %v3249_v26 = vpop.eup %3248  ;;  %3268 = vrcp.f32 %v1738_v56 }
 0x213   : > { %v3251_v51 = vpop.eup %3250  ;;  %v1921_v5 = vmul.f32 %v3249_v26, %v4698_v37  ;;  %3270 = vrcp.f32 %v1740_v2 }
 0x214   : > { %v3253_v44 = vpop.eup %3252  ;;  %v1923_v20 = vmul.f32 %v3251_v51, %v4699_v34 }
 0x215   : > { %v3255_v38 = vpop.eup %3254  ;;  %v1922_v31 = vmul.f32 %v3253_v44, %v4700_v24  ;;  %v1985_v10 = vmul.f32 %v1921_v5, %v4509_v50 }
 0x216   : > { %v3257_v36 = vpop.eup %3256  ;;  %v1924_v12 = vmul.f32 %v3255_v38, %v4701_v54  ;;  %v1987_v41 = vmul.f32 %v1923_v20, %v4512_v28  ;;  %v2000_v38 = vld [vmem:[#allocation2 + $0x18] sm:$0xff] }
 0x217   : > { %v3259_v25 = vpop.eup %3258  ;;  %v1925_v43 = vmul.f32 %v3257_v36, %v4702_v45  ;;  %v1986_v58 = vmul.f32 %v1922_v31, %v4514_v42 }
 0x218   : > { %v3261_v37 = vpop.eup %3260  ;;  %v1927_v48 = vmul.f32 %v3259_v25, %v4703_v52  ;;  %v1988_v34 = vmul.f32 %v1924_v12, %v4516_v57 }
 0x219   : > { %v3263_v46 = vpop.eup %3262  ;;  %v1926_v24 = vmul.f32 %v3261_v37, %v4704_v3  ;;  %v1989_v63 = vmul.f32 %v1925_v43, %v1313_v47  ;;  %2142 = vmatprep.mubr.f32.mxu0 %v1986_v58  ;;  %v2001_v37 = vld [vmem:[#allocation2 + $0x20] sm:$0xff] }
 0x21a   : > { %v3265_v50 = vpop.eup %3264  ;;  %v1928_v54 = vmul.f32 %v3263_v46, %v4705_v39  ;;  %v1991_v9 = vmul.f32 %v1927_v48, %v1474_v4  ;;  %2287 = vmatprep.mubr.f32.mxu1 %v1988_v34  ;;  %2143 = vmatmul.mubr.f32.gmra.mrb[90].mxu0 %v1985_v10 }
 0x21b   : > { %v3267_v28 = vpop.eup %3266  ;;  %v1929_v45 = vmul.f32 %v3265_v50, %v4706_v17  ;;  %v1990_v42 = vmul.f32 %v1926_v24, %v1315_v33  ;;  %2288 = vmatmul.mubr.f32.gmra.mrb[90].mxu1 %v1987_v41  ;;  %v1997_v33 = vld [vmem:[#allocation2] sm:$0xff] }
 0x21c   : > { %v3269_v0 = vpop.eup %3268  ;;  %v1931_v52 = vmul.f32 %v3267_v28, %v4707_v6  ;;  %v1992_v57 = vmul.f32 %v1928_v54, %v1476_v59  ;;  %v2002_v28 = vld [vmem:[#allocation2 + $0x28] sm:$0xff] }
 0x21d   : > { %v3271_v1 = vpop.eup %3270  ;;  %v1930_v3 = vmul.f32 %v3269_v0, %v4708_v40  ;;  %v1993_v55 = vmul.f32 %v1929_v45, %v1319_v22  ;;  %2147 = vmatprep.mubr.f32.mxu0 %v1990_v42  ;;  %v1998_v22 = vld [vmem:[#allocation2 + $0x8] sm:$0xff] }
 0x21e   : > { %v1932_v11 = vmul.f32 %v3271_v1, %v4709_v30  ;;  %v1995_v39 = vmul.f32 %v1931_v52, %v1480_v35  ;;  %2292 = vmatprep.mubr.f32.mxu1 %v1992_v57  ;;  %2148 = vmatmul.mubr.f32.gmra.mrb[92].mxu0 %v1989_v63 }
 0x21f   : > { %v1994_v53 = vmul.f32 %v1930_v3, %v1321_v32  ;;  %2293 = vmatmul.mubr.f32.gmra.mrb[92].mxu1 %v1991_v9 }
 0x220   : > { %v1996_v47 = vmul.f32 %v1932_v11, %v1482_v23  ;;  %v2003_v11 = vld [vmem:[#allocation2 + $0x30] sm:$0xff] }
 0x221   : > { %2152 = vmatprep.mubr.f32.mxu0 %v1994_v53 }
 0x222   : > { %2297 = vmatprep.mubr.f32.mxu1 %v1996_v47  ;;  %2153 = vmatmul.mubr.f32.gmra.mrb[94].mxu0 %v1993_v55 }
 0x223   : > { %2298 = vmatmul.mubr.f32.gmra.mrb[94].mxu1 %v1995_v39 }
 0x2a9   : > { %v2621_v17 = vpop.f32.mrb[64].mxu0 }
 0x2aa   : > { %v2701_v6 = vpop.f32.mrb[64].mxu1  ;;  %v2622_v13 = vpop.f32.mrb[65].mxu0 }
 0x2ab   : > { %v2623_v19 = vadd.f32 %v2622_v13, %v2621_v17  ;;  %v2702_v4 = vpop.f32.mrb[65].mxu1 }
 0x2ac   : > { %v2703_v40 = vadd.f32 %v2702_v4, %v2701_v6 }
 0x2ad   : > { %v2624_v7 = vpop.f32.mrb[66].mxu0 }
 0x2ae   : > { %v2225_v14 = vadd.f32 %v2703_v40, %v2623_v19  ;;  %v2704_v30 = vpop.f32.mrb[66].mxu1  ;;  %v2625_v59 = vpop.f32.mrb[67].mxu0  ;;  %v2004_v40 = vld [vmem:[#allocation2 + $0x38] sm:$0xff] }
 0x2af   : > { %v2626_v16 = vadd.f32 %v2625_v59, %v2624_v7  ;;  %v2705_v61 = vpop.f32.mrb[67].mxu1 }
 0x2b0   : > { %v2303_v15 = vadd.f32 %v2225_v14, %v1997_v33  ;;  %v2706_v62 = vadd.f32 %v2705_v61, %v2704_v30 }
 0x2b1   : > { %v2627_v49 = vpop.f32.mrb[68].mxu0 }
 0x2b2   : > { %2319 = vst [vmem:[#allocation2] sm:$0xff] %v2303_v15  ;;  %v2230_v18 = vadd.f32 %v2706_v62, %v2626_v16  ;;  %v2707_v35 = vpop.f32.mrb[68].mxu1  ;;  %v2628_v32 = vpop.f32.mrb[69].mxu0  ;;  %v2005_v62 = vld [vmem:[#allocation2 + $0x40] sm:$0xff] }
 0x2b3   : > { %v2629_v21 = vadd.f32 %v2628_v32, %v2627_v49  ;;  %v2708_v29 = vpop.f32.mrb[69].mxu1 }
 0x2b4   : > { %v2304_v23 = vadd.f32 %v2230_v18, %v1998_v22  ;;  %v2709_v60 = vadd.f32 %v2708_v29, %v2707_v35 }
 0x2b5   : > { %v2630_v27 = vpop.f32.mrb[70].mxu0 }
 0x2b6   : > { %2320 = vst [vmem:[#allocation2 + $0x8] sm:$0xff] %v2304_v23  ;;  %v2235_v56 = vadd.f32 %v2709_v60, %v2629_v21  ;;  %v2710_v2 = vpop.f32.mrb[70].mxu1  ;;  %v2631_v26 = vpop.f32.mrb[71].mxu0  ;;  %v2006_v60 = vld [vmem:[#allocation2 + $0x48] sm:$0xff] }
 0x2b7   : > { %v2632_v51 = vadd.f32 %v2631_v26, %v2630_v27  ;;  %v2711_v5 = vpop.f32.mrb[71].mxu1 }
 0x2b8   : > { %v2305_v44 = vadd.f32 %v2235_v56, %v1999_v8  ;;  %v2712_v20 = vadd.f32 %v2711_v5, %v2710_v2 }
 0x2b9   : > { %v2633_v31 = vpop.f32.mrb[72].mxu0 }
 0x2ba   : > { %2321 = vst [vmem:[#allocation2 + $0x10] sm:$0xff] %v2305_v44  ;;  %v2240_v10 = vadd.f32 %v2712_v20, %v2632_v51  ;;  %v2713_v36 = vpop.f32.mrb[72].mxu1  ;;  %v2634_v12 = vpop.f32.mrb[73].mxu0  ;;  %v2007_v20 = vld [vmem:[#allocation2 + $0x50] sm:$0xff] }
 0x2bb   : > { %v2635_v41 = vadd.f32 %v2634_v12, %v2633_v31  ;;  %v2714_v25 = vpop.f32.mrb[73].mxu1 }
 0x2bc   : > { %v2306_v43 = vadd.f32 %v2240_v10, %v2000_v38  ;;  %v2715_v58 = vadd.f32 %v2714_v25, %v2713_v36 }
 0x2bd   : > { %v2636_v48 = vpop.f32.mrb[74].mxu0 }
 0x2be   : > { %2322 = vst [vmem:[#allocation2 + $0x18] sm:$0xff] %v2306_v43  ;;  %v2245_v34 = vadd.f32 %v2715_v58, %v2635_v41  ;;  %v2716_v46 = vpop.f32.mrb[74].mxu1  ;;  %v2637_v24 = vpop.f32.mrb[75].mxu0  ;;  %v2008_v58 = vld [vmem:[#allocation2 + $0x58] sm:$0xff] }
 0x2bf   : > { %v2638_v63 = vadd.f32 %v2637_v24, %v2636_v48  ;;  %v2717_v50 = vpop.f32.mrb[75].mxu1 }
 0x2c0   : > { %v2307_v54 = vadd.f32 %v2245_v34, %v2001_v37  ;;  %v2718_v9 = vadd.f32 %v2717_v50, %v2716_v46 }
 0x2c1   : > { %v2639_v45 = vpop.f32.mrb[76].mxu0 }
 0x2c2   : > { %2323 = vst [vmem:[#allocation2 + $0x20] sm:$0xff] %v2307_v54  ;;  %v2250_v42 = vadd.f32 %v2718_v9, %v2638_v63  ;;  %v2719_v0 = vpop.f32.mrb[76].mxu1  ;;  %v2640_v52 = vpop.f32.mrb[77].mxu0  ;;  %v2009_v9 = vld [vmem:[#allocation2 + $0x60] sm:$0xff] }
 0x2c3   : > { %v2641_v57 = vadd.f32 %v2640_v52, %v2639_v45  ;;  %v2720_v1 = vpop.f32.mrb[77].mxu1 }
 0x2c4   : > { %v2308_v3 = vadd.f32 %v2250_v42, %v2002_v28  ;;  %v2721_v55 = vadd.f32 %v2720_v1, %v2719_v0 }
 0x2c5   : > { %v2642_v39 = vpop.f32.mrb[78].mxu0 }
 0x2c6   : > { %2324 = vst [vmem:[#allocation2 + $0x28] sm:$0xff] %v2308_v3  ;;  %v2255_v53 = vadd.f32 %v2721_v55, %v2641_v57  ;;  %v2722_v47 = vpop.f32.mrb[78].mxu1  ;;  %v2643_v17 = vpop.f32.mrb[79].mxu0  ;;  %v2010_v55 = vld [vmem:[#allocation2 + $0x68] sm:$0xff] }
 0x2c7   : > { %v2644_v6 = vadd.f32 %v2643_v17, %v2642_v39  ;;  %v2723_v13 = vpop.f32.mrb[79].mxu1 }
 0x2c8   : > { %v2309_v19 = vadd.f32 %v2255_v53, %v2003_v11  ;;  %v2724_v4 = vadd.f32 %v2723_v13, %v2722_v47 }
 0x2c9   : > { %v2645_v33 = vpop.f32.mrb[80].mxu0 }
 0x2ca   : > { %2325 = vst [vmem:[#allocation2 + $0x30] sm:$0xff] %v2309_v19  ;;  %v2260_v7 = vadd.f32 %v2724_v4, %v2644_v6  ;;  %v2725_v14 = vpop.f32.mrb[80].mxu1  ;;  %v2646_v30 = vpop.f32.mrb[81].mxu0  ;;  %v2011_v4 = vld [vmem:[#allocation2 + $0x70] sm:$0xff] }
 0x2cb   : > { %v2647_v59 = vadd.f32 %v2646_v30, %v2645_v33  ;;  %v2726_v16 = vpop.f32.mrb[81].mxu1 }
 0x2cc   : > { %v2310_v61 = vadd.f32 %v2260_v7, %v2004_v40  ;;  %v2727_v15 = vadd.f32 %v2726_v16, %v2725_v14 }
 0x2cd   : > { %v2648_v22 = vpop.f32.mrb[82].mxu0 }
 0x2ce   : > { %2326 = vst [vmem:[#allocation2 + $0x38] sm:$0xff] %v2310_v61  ;;  %v2265_v49 = vadd.f32 %v2727_v15, %v2647_v59  ;;  %v2649_v18 = vpop.f32.mrb[83].mxu0  ;;  %v2012_v15 = vld [vmem:[#allocation2 + $0x78] sm:$0xff] }
 0x2cf   : > { %v2650_v35 = vadd.f32 %v2649_v18, %v2648_v22  ;;  %v2340_v18 = vld [vmem:[#allocation2 + $0x8] sm:$0xff] (!%p2586_p8) }
 0x2d0   : > { %v2311_v32 = vadd.f32 %v2265_v49, %v2005_v62  ;;  %v2339_v49 = vld [vmem:[#allocation2] sm:$0xff] (!%p2586_p8)  ;;  %2356 = vst [vmem:[%s3769_s23 + $0x8] sm:$0xff] (!%p2586_p8), %v2340_v18 }
 0x2d1   : > { %v2728_v21 = vpop.f32.mrb[82].mxu1  ;;  %2355 = vst [vmem:[%s3769_s23] sm:$0xff] (!%p2586_p8), %v2339_v49 }
 0x2d2   : > { %2327 = vst [vmem:[#allocation2 + $0x40] sm:$0xff] %v2311_v32  ;;  %v2729_v29 = vpop.f32.mrb[83].mxu1  ;;  %v2342_v32 = vld [vmem:[#allocation2 + $0x18] sm:$0xff] (!%p2586_p8) }
 0x2d3   : > { %v2730_v23 = vadd.f32 %v2729_v29, %v2728_v21  ;;  %v2343_v21 = vld [vmem:[#allocation2 + $0x20] sm:$0xff] (!%p2586_p8)  ;;  %v2344_v29 = vld [vmem:[#allocation2 + $0x28] sm:$0xff] (!%p2586_p8)  ;;  %2358 = vst [vmem:[%s3769_s23 + $0x18] sm:$0xff] (!%p2586_p8), %v2342_v32 }
 0x2d4   : > { %v2651_v8 = vpop.f32.mrb[84].mxu0  ;;  %2359 = vst [vmem:[%s3769_s23 + $0x20] sm:$0xff] (!%p2586_p8), %v2343_v21  ;;  %2360 = vst [vmem:[%s3769_s23 + $0x28] sm:$0xff] (!%p2586_p8), %v2344_v29 }
 0x2d5   : > { %v2270_v27 = vadd.f32 %v2730_v23, %v2650_v35  ;;  %v2731_v56 = vpop.f32.mrb[84].mxu1  ;;  %v2652_v2 = vpop.f32.mrb[85].mxu0  ;;  %v2341_v35 = vld [vmem:[#allocation2 + $0x10] sm:$0xff] (!%p2586_p8) }
 0x2d6   : > { %v2653_v26 = vadd.f32 %v2652_v2, %v2651_v8  ;;  %v2732_v51 = vpop.f32.mrb[85].mxu1  ;;  %2357 = vst [vmem:[%s3769_s23 + $0x10] sm:$0xff] (!%p2586_p8), %v2341_v35  ;;  %v2345_v23 = vld [vmem:[#allocation2 + $0x30] sm:$0xff] (!%p2586_p8) }
 0x2d7   : > { %v2312_v5 = vadd.f32 %v2270_v27, %v2006_v60  ;;  %v2733_v44 = vadd.f32 %v2732_v51, %v2731_v56  ;;  %v2346_v60 = vld [vmem:[#allocation2 + $0x38] sm:$0xff] (!%p2586_p8)  ;;  %2361 = vst [vmem:[%s3769_s23 + $0x30] sm:$0xff] (!%p2586_p8), %v2345_v23 }
 0x2d8   : > { %v2654_v38 = vpop.f32.mrb[86].mxu0  ;;  %2362 = vst [vmem:[%s3769_s23 + $0x38] sm:$0xff] (!%p2586_p8), %v2346_v60 }
 0x2d9   : > { %2328 = vst [vmem:[#allocation2 + $0x48] sm:$0xff] %v2312_v5  ;;  %v2275_v31 = vadd.f32 %v2733_v44, %v2653_v26  ;;  %v2734_v10 = vpop.f32.mrb[86].mxu1  ;;  %v2655_v36 = vpop.f32.mrb[87].mxu0  ;;  %v2347_v8 = vld [vmem:[#allocation2 + $0x40] sm:$0xff] (!%p2586_p8) }
 0x2da   : > { %v2656_v12 = vadd.f32 %v2655_v36, %v2654_v38  ;;  %v2735_v41 = vpop.f32.mrb[87].mxu1  ;;  %2363 = vst [vmem:[%s3769_s23 + $0x40] sm:$0xff] (!%p2586_p8), %v2347_v8 }
 0x2db   : > { %v2313_v25 = vadd.f32 %v2275_v31, %v2007_v20  ;;  %v2736_v43 = vadd.f32 %v2735_v41, %v2734_v10 }
 0x2dc   : > { %v2657_v37 = vpop.f32.mrb[88].mxu0 }
 0x2dd   : > { %2329 = vst [vmem:[#allocation2 + $0x50] sm:$0xff] %v2313_v25  ;;  %v2280_v48 = vadd.f32 %v2736_v43, %v2656_v12  ;;  %v2737_v34 = vpop.f32.mrb[88].mxu1  ;;  %v2658_v46 = vpop.f32.mrb[89].mxu0 }
 0x2de   : > { %v2659_v24 = vadd.f32 %v2658_v46, %v2657_v37  ;;  %v2738_v63 = vpop.f32.mrb[89].mxu1 }
 0x2df   : > { %v2314_v50 = vadd.f32 %v2280_v48, %v2008_v58  ;;  %v2739_v54 = vadd.f32 %v2738_v63, %v2737_v34 }
 0x2e0   : > { %v2348_v27 = vld [vmem:[#allocation2 + $0x48] sm:$0xff] (!%p2586_p8) }
 0x2e1   : > { %2330 = vst [vmem:[#allocation2 + $0x58] sm:$0xff] %v2314_v50  ;;  %v2285_v28 = vadd.f32 %v2739_v54, %v2659_v24  ;;  %2364 = vst [vmem:[%s3769_s23 + $0x48] sm:$0xff] (!%p2586_p8), %v2348_v27 }
 0x2e3   : > { %v2315_v45 = vadd.f32 %v2285_v28, %v2009_v9 }
 0x2e4   : > { %v2349_v56 = vld [vmem:[#allocation2 + $0x50] sm:$0xff] (!%p2586_p8) }
 0x2e5   : > { %2331 = vst [vmem:[#allocation2 + $0x60] sm:$0xff] %v2315_v45  ;;  %2365 = vst [vmem:[%s3769_s23 + $0x50] sm:$0xff] (!%p2586_p8), %v2349_v56 }
 0x2e8   : > { %v2350_v2 = vld [vmem:[#allocation2 + $0x58] sm:$0xff] (!%p2586_p8) }
 0x2e9   : > { %2366 = vst [vmem:[%s3769_s23 + $0x58] sm:$0xff] (!%p2586_p8), %v2350_v2 }
 0x2ec   : > { %v2351_v26 = vld [vmem:[#allocation2 + $0x60] sm:$0xff] (!%p2586_p8) }
 0x2ed   : > { %v2660_v42 = vpop.f32.mrb[90].mxu0  ;;  %2367 = vst [vmem:[%s3769_s23 + $0x60] sm:$0xff] (!%p2586_p8), %v2351_v26 }
 0x2ee   : > { %v2740_v0 = vpop.f32.mrb[90].mxu1  ;;  %v2661_v52 = vpop.f32.mrb[91].mxu0 }
 0x2ef   : > { %v2662_v57 = vadd.f32 %v2661_v52, %v2660_v42  ;;  %v2741_v1 = vpop.f32.mrb[91].mxu1 }
 0x2f0   : > { %v2742_v3 = vadd.f32 %v2741_v1, %v2740_v0 }
 0x2f1   : > { %v2663_v11 = vpop.f32.mrb[92].mxu0 }
 0x2f2   : > { %v2290_v39 = vadd.f32 %v2742_v3, %v2662_v57  ;;  %v2743_v53 = vpop.f32.mrb[92].mxu1  ;;  %v2664_v47 = vpop.f32.mrb[93].mxu0 }
 0x2f3   : > { %v2665_v17 = vadd.f32 %v2664_v47, %v2663_v11  ;;  %v2744_v6 = vpop.f32.mrb[93].mxu1 }
 0x2f4   : > { %v2316_v13 = vadd.f32 %v2290_v39, %v2010_v55  ;;  %v2745_v19 = vadd.f32 %v2744_v6, %v2743_v53 }
 0x2f5   : > { %v2666_v40 = vpop.f32.mrb[94].mxu0 }
 0x2f6   : > { %2332 = vst [vmem:[#allocation2 + $0x68] sm:$0xff] %v2316_v13  ;;  %v2295_v33 = vadd.f32 %v2745_v19, %v2665_v17  ;;  %v2746_v7 = vpop.f32.mrb[94].mxu1  ;;  %v2667_v14 = vpop.f32.mrb[95].mxu0 }
 0x2f7   : > { %v2668_v30 = vadd.f32 %v2667_v14, %v2666_v40  ;;  %v2747_v59 = vpop.f32.mrb[95].mxu1 }
 0x2f8   : > { %v2317_v16 = vadd.f32 %v2295_v33, %v2011_v4  ;;  %v2748_v61 = vadd.f32 %v2747_v59, %v2746_v7  ;;  %2338 = sbr.rel (%p2586_p8) target bundleno = 775 (0x307), region = 90 }
 0x2fa   : > { %2333 = vst [vmem:[#allocation2 + $0x70] sm:$0xff] %v2317_v16  ;;  %v2300_v62 = vadd.f32 %v2748_v61, %v2668_v30 }
 0x2fc   : > { %v2318_v22 = vadd.f32 %v2300_v62, %v2012_v15 }
 0x2fd   : > { %v2352_v51 = vld [vmem:[#allocation2 + $0x68] sm:$0xff] (!%p2586_p8) }
 0x2fe   : > { %2334 = vst [vmem:[#allocation2 + $0x78] sm:$0xff] %v2318_v22  ;;  %2368 = vst [vmem:[%s3769_s23 + $0x68] sm:$0xff] (!%p2586_p8), %v2352_v51 }
 0x301   : > { %v2353_v5 = vld [vmem:[#allocation2 + $0x70] sm:$0xff] }
 0x302   : > { %2369 = vst [vmem:[%s3769_s23 + $0x70] sm:$0xff] %v2353_v5 }
 0x305   : > { %v2354_v44 = vld [vmem:[#allocation2 + $0x78] sm:$0xff] }
 0x306   : > { %2370 = vst [vmem:[%s3769_s23 + $0x78] sm:$0xff] %v2354_v44 }
 0x307 PF: > { %s21_s30 = sadd.s32 1, %s3356_s30   ;;  %s4710_s2 = sld [smem:[#allocation8_spill]] }
 0x308   : > { %p18_p9 = scmp.ge.s32.totalorder %s21_s30, 18   ;;  %s4711_s23 = smov %s3328_s24 }
 0x309   : > { %s4712_s24 = smov %s3471_s22  ;;  %s4713_s25 = smov %s3336_s0 }
 0x30a   : > { %s4714_s0 = smov %s3468_s21  ;;  %s4715_s26 = smov %s3348_s28 }
 0x30b   : > { %s4716_s27 = smov %s3352_s29  ;;  %s4717_s28 = smov %s4720_s6 }
 0x30c   :  { %20 = sbr.rel (!%p18_p9) target bundleno = 20 (0x14), region = 139 }
 0x30d   : > { %s4718_s29 = smov %s4710_s2 }

</bundles_post_ra>
